<compile_context>
chip_gen: v7x
topology: tpu7x:2x2x1
jax: 0.10.0
libtpu: 0.0.40
codegen_flags: <defaults>
</compile_context>

<pallas_src>
import math
from functools import partial

import jax
import jax.numpy as jnp
from jax.experimental import pallas as pl
from jax.experimental.pallas import tpu as pltpu

INV_SQRT2 = 1.0 / math.sqrt(2.0)


def _maybe_cast(a, dtype):
    return a if dtype is None else a.astype(dtype)


# ----------------------------------------------------------------------------
# Kernel A (resident weights): one grid step per batch tile, full R x L loop
# unrolled in-kernel, activation carried in registers.
# ----------------------------------------------------------------------------
def _resnet_resident_kernel(x_ref, *refs, num_res_blocks, num_layers,
                            use_attention, final_scale, final_tanh,
                            matmul_dtype):
    out_ref = refs[-1]
    prefs = refs[:-1]

    idx = 0
    layer_refs = []
    for _ in range(num_layers):
        layer_refs.append((prefs[idx], prefs[idx + 1], prefs[idx + 2]))
        idx += 3
    if use_attention:
        wf_ref, bf_ref = prefs[idx], prefs[idx + 1]
        idx += 2
    if final_scale:
        scale_ref = prefs[idx]
        idx += 1

    x = x_ref[...]                                     # (D, TB), batch on lanes
    for r in range(num_res_blocks):
        # --- residual MLP block:  [Swish(w_j) -> weight_norm Linear] * L
        h = x
        for j in range(num_layers):
            beta_ref, w_ref, b_ref = layer_refs[j]
            beta = beta_ref[r]                         # (d_in, 1)
            h = h * jax.nn.sigmoid(beta * h)           # Swish, f32 elementwise
            h = jnp.dot(_maybe_cast(w_ref[r], matmul_dtype),
                        _maybe_cast(h, matmul_dtype),
                        preferred_element_type=jnp.float32) + b_ref[r]
        x = (x + h) * INV_SQRT2
        # --- seq_len==1 MHA == fused (out_proj @ V_proj) x + fused bias
        if use_attention:
            x = jnp.dot(_maybe_cast(wf_ref[r], matmul_dtype),
                        _maybe_cast(x, matmul_dtype),
                        preferred_element_type=jnp.float32) + bf_ref[r]

    if final_scale:
        x = x * scale_ref[...]                         # (D, 1) broadcast
    if final_tanh:
        x = jnp.tanh(x)
    out_ref[...] = x.astype(out_ref.dtype)             # lane-dense store


# ----------------------------------------------------------------------------
# Kernel B (streamed weights, large D): one res block per inner grid step,
# activation carried across r in a VMEM scratch.
# ----------------------------------------------------------------------------
def _resnet_stream_kernel(x_ref, *refs, num_layers, use_attention,
                          final_scale, final_tanh, matmul_dtype):
    acc_ref = refs[-1]
    out_ref = refs[-2]
    prefs = refs[:-2]

    idx = 0
    layer_refs = []
    for _ in range(num_layers):
        layer_refs.append((prefs[idx], prefs[idx + 1], prefs[idx + 2]))
        idx += 3
    if use_attention:
        wf_ref, bf_ref = prefs[idx], prefs[idx + 1]
        idx += 2
    if final_scale:
        scale_ref = prefs[idx]
        idx += 1

    r = pl.program_id(1)
    last = pl.num_programs(1) - 1

    @pl.when(r == 0)
    def _():
        acc_ref[...] = x_ref[...]

    x = acc_ref[...]                                   # (D, TB)

    h = x
    for j in range(num_layers):
        beta_ref, w_ref, b_ref = layer_refs[j]
        beta = beta_ref[0]                             # (d_in, 1)
        h = h * jax.nn.sigmoid(beta * h)
        h = jnp.dot(_maybe_cast(w_ref[0], matmul_dtype),
                    _maybe_cast(h, matmul_dtype),
                    preferred_element_type=jnp.float32) + b_ref[0]
    x = (x + h) * INV_SQRT2

    if use_attention:
        x = jnp.dot(_maybe_cast(wf_ref[0], matmul_dtype),
                    _maybe_cast(x, matmul_dtype),
                    preferred_element_type=jnp.float32) + bf_ref[0]

    # Carry to the next res block; skip the store on the last block (it would
    # never be read again).
    @pl.when(r != last)
    def _():
        acc_ref[...] = x

    @pl.when(r == last)
    def _():
        y = x
        if final_scale:
            y = y * scale_ref[...]
        if final_tanh:
            y = jnp.tanh(y)
        out_ref[...] = y.astype(out_ref.dtype)


# ----------------------------------------------------------------------------
# Parameter preparation (plain-JAX glue): weight_norm fold, V-slice, fusion.
# ----------------------------------------------------------------------------
def prepare_kernel_params(raw_params, *, widths, use_attention, final_scale):
    res_blocks, attn, scale = raw_params
    R = len(res_blocks)
    L = len(widths) - 1
    D = widths[0]
    hi = jax.lax.Precision.HIGHEST

    flat = []
    for j in range(L):
        betas = jnp.stack([res_blocks[r][j][0] for r in range(R)])[:, :, None]
        ws = []
        for r in range(R):
            _, g, v, _ = res_blocks[r][j]
            w = g * v / jnp.sqrt(jnp.sum(v * v, axis=1, keepdims=True))
            ws.append(w)                                  # (d_out, d_in)
        Ws = jnp.stack(ws)                                # (R, d_out, d_in)
        bs = jnp.stack([res_blocks[r][j][3] for r in range(R)])[:, :, None]
        flat.extend([betas, Ws, bs])

    if use_attention:
        wfs, bfs = [], []
        for r in range(R):
            in_w, in_b, out_w, out_b = attn[r]
            w_v = in_w[2 * D:3 * D]                       # V rows only; Q/K unused
            b_v = in_b[2 * D:3 * D]
            w_f = jnp.dot(out_w, w_v, precision=hi)       # fuse V-proj + out-proj
            b_f = jnp.dot(out_w, b_v, precision=hi) + out_b
            wfs.append(w_f)
            bfs.append(b_f[:, None])
        flat.extend([jnp.stack(wfs), jnp.stack(bfs)])     # (R, D, D), (R, D, 1)

    if final_scale:
        flat.append(scale[:, None])                       # (D, 1)

    return flat


# ----------------------------------------------------------------------------
# Wrapper
# ----------------------------------------------------------------------------
def resnet_forward(x, raw_params, *, widths, use_attention=True,
                   final_scale=True, final_tanh=True, batch_tile=512,
                   feature_major=False, weight_resident=None,
                   matmul_dtype=None, out_dtype=jnp.float32):
    res_blocks, _, _ = raw_params
    R = len(res_blocks)
    L = len(widths) - 1

    if feature_major:
        D, B = x.shape           # accept/return (D, B): no wrapper transposes
        x_cols = x
    else:
        B, D = x.shape
        x_cols = x.T             # negligible at small B; pass feature_major=True
                                 # for large-B memory-bound deployments
    assert D == widths[0] == widths[-1]

    batch_tile = min(batch_tile, B)
    assert B % batch_tile == 0
    assert batch_tile % 128 == 0 or batch_tile == B, \
        "batch_tile must be a multiple of 128 (or the full batch)"

    flat = prepare_kernel_params(raw_params, widths=widths,
                                 use_attention=use_attention,
                                 final_scale=final_scale)

    # --- VMEM budgeting (conservative for v7x's 32 MiB default scoped VMEM) --
    param_bytes = 4 * sum(int(p.size) for p in flat)
    per_block_param_bytes = (param_bytes + R - 1) // R
    act_tile_bytes = 4 * D * batch_tile
    resident_vmem = 2 * param_bytes + 4 * act_tile_bytes            # weights + 2x(in,out)
    stream_vmem = 2 * per_block_param_bytes + 5 * act_tile_bytes    # + acc scratch
    if weight_resident is None:
        weight_resident = resident_vmem <= 24 * 1024 * 1024
    vmem_estimate = resident_vmem if weight_resident else stream_vmem
    vmem_limit = int(min(64 * 1024 * 1024,
                         max(32 * 1024 * 1024, 2 * vmem_estimate)))

    n_tiles = B // batch_tile

    # --- specs / grid ---------------------------------------------------------
    if weight_resident:
        in_specs = [pl.BlockSpec((D, batch_tile), lambda i: (0, i))]
        for p in flat:
            if p.ndim == 3:   # full (R, ...) stack resident, fetched once
                in_specs.append(pl.BlockSpec(p.shape, lambda i: (0, 0, 0)))
            else:             # final scale (D, 1)
                in_specs.append(pl.BlockSpec(p.shape, lambda i: (0, 0)))
        out_specs = pl.BlockSpec((D, batch_tile), lambda i: (0, i))
        grid = (n_tiles,)
        scratch_shapes = []
        dim_sem = ("parallel",)
        kernel = partial(_resnet_resident_kernel, num_res_blocks=R,
                         num_layers=L, use_attention=use_attention,
                         final_scale=final_scale, final_tanh=final_tanh,
                         matmul_dtype=matmul_dtype)
        weight_reads = 1
    else:
        in_specs = [pl.BlockSpec((D, batch_tile), lambda i, r: (0, i))]
        for p in flat:
            if p.ndim == 3:   # stream one res block's weights per inner step
                in_specs.append(
                    pl.BlockSpec((1,) + p.shape[1:], lambda i, r: (r, 0, 0)))
            else:
                in_specs.append(pl.BlockSpec(p.shape, lambda i, r: (0, 0)))
        out_specs = pl.BlockSpec((D, batch_tile), lambda i, r: (0, i))
        grid = (n_tiles, R)                      # res-block (carry) axis last
        scratch_shapes = [pltpu.VMEM((D, batch_tile), jnp.float32)]
        dim_sem = ("parallel", "arbitrary")
        kernel = partial(_resnet_stream_kernel, num_layers=L,
                         use_attention=use_attention, final_scale=final_scale,
                         final_tanh=final_tanh, matmul_dtype=matmul_dtype)
        weight_reads = n_tiles

    # --- advisory cost estimate ----------------------------------------------
    mm_flops = sum(widths[j] * widths[j + 1] for j in range(L))
    if use_attention:
        mm_flops += D * D
    flops = 2 * B * R * mm_flops
    transcend = B * R * sum(widths[:-1]) + (B * D if final_tanh else 0)
    bytes_accessed = 4 * B * D * 2 + weight_reads * param_bytes

    out_cols = pl.pallas_call(
        kernel,
        out_shape=jax.ShapeDtypeStruct((D, B), out_dtype),
        grid_spec=pltpu.PrefetchScalarGridSpec(
            num_scalar_prefetch=0,
            grid=grid,
            in_specs=in_specs,
            out_specs=out_specs,
            scratch_shapes=scratch_shapes,
        ),
        compiler_params=pltpu.CompilerParams(
            dimension_semantics=dim_sem,
            vmem_limit_bytes=vmem_limit),
        cost_estimate=pl.CostEstimate(flops=flops,
                                      transcendentals=transcend,
                                      bytes_accessed=bytes_accessed),
    )(x_cols, *flat)

    return out_cols if feature_major else out_cols.T


# ----------------------------------------------------------------------------
# Deterministic parameter init (mirrors the module's __init__ shapes).
# Biases are randomized (module inits them to 0) so the fused-bias path is
# actually exercised by the correctness check.
# ----------------------------------------------------------------------------
def init_resnet_params(key, num_res_blocks, widths, *, num_heads=4,
                       use_attention=True, final_scale=True):
    R = num_res_blocks
    D = widths[0]
    L = len(widths) - 1
    assert D % num_heads == 0   # num_heads does not change the math at seq_len==1
    keys = iter(jax.random.split(key, 2 * R * L + 4 * R + 1))

    res_blocks = []
    for _ in range(R):
        layers = []
        for j in range(L):
            d_in, d_out = widths[j], widths[j + 1]
            # TODO(synk): `Swish(dim)` class not given in snippet; assumed
            # learnable per-feature beta (init = 1): x * sigmoid(beta * x).
            beta = jnp.ones((d_in,), jnp.float32)
            bound = math.sqrt(2.81 * 3 / d_in)
            v = jax.random.uniform(next(keys), (d_out, d_in), jnp.float32,
                                   -bound, bound)
            g = jnp.sqrt(jnp.sum(v * v, axis=1, keepdims=True))  # weight_norm init
            b = 0.1 * jax.random.normal(next(keys), (d_out,), jnp.float32)
            layers.append((beta, g, v, b))
        res_blocks.append(layers)

    attn = None
    if use_attention:
        attn = []
        for _ in range(R):
            a = math.sqrt(6.0 / (3 * D + D))          # xavier_uniform(in_proj)
            in_w = jax.random.uniform(next(keys), (3 * D, D), jnp.float32, -a, a)
            in_b = 0.1 * jax.random.normal(next(keys), (3 * D,), jnp.float32)
            ob = 1.0 / math.sqrt(D)
            out_w = jax.random.uniform(next(keys), (D, D), jnp.float32, -ob, ob)
            out_b = 0.1 * jax.random.normal(next(keys), (D,), jnp.float32)
            attn.append((in_w, in_b, out_w, out_b))

    scale = None
    if final_scale:
        # TODO(synk): `Scale` class not given in snippet; assumed learnable
        # per-feature multiplicative scale.
        scale = 1.0 + 0.1 * jax.random.normal(next(keys), (D,), jnp.float32)

    return res_blocks, attn, scale


# ----------------------------------------------------------------------------
# Pure-JAX reference following the PyTorch forward (un-fused attention path).
# ----------------------------------------------------------------------------
def resnet_reference(x, raw_params, *, widths, use_attention=True,
                     final_scale=True, final_tanh=True):
    res_blocks, attn, scale = raw_params
    D = widths[0]
    for r in range(len(res_blocks)):
        h = x
        for (beta, g, v, b) in res_blocks[r]:
            w = g * v / jnp.sqrt(jnp.sum(v * v, axis=1, keepdims=True))
            h = h * jax.nn.sigmoid(beta[None, :] * h)
            h = h @ w.T + b[None, :]
        x = (x + h) / math.sqrt(2.0)
        if use_attention:
            in_w, in_b, out_w, out_b = attn[r]
            qkv = x @ in_w.T + in_b[None, :]
            v_ = qkv[:, 2 * D:3 * D]    # softmax over the single key == 1 per head
            x = v_ @ out_w.T + out_b[None, :]
    if final_scale and scale is not None:
        x = x * scale[None, :]
    if final_tanh:
        x = jnp.tanh(x)
    return x


if __name__ == "__main__":
    num_res_blocks = 2
    widths = (32, 64, 32)
    num_heads = 4
    B = 1024
    batch_tile = 512   # B // batch_tile == 2: both v7x TCs get a batch tile

    key = jax.random.PRNGKey(0)
    kp, kx = jax.random.split(key)
    raw_params = init_resnet_params(
        kp, num_res_blocks, widths, num_heads=num_heads,
        use_attention=True, final_scale=True)
    x = jax.random.normal(kx, (B, widths[0]), jnp.float32)

    ref = resnet_reference(
        x, raw_params, widths=widths,
        use_attention=True, final_scale=True, final_tanh=True)

    # Default (auto-selected) path: resident weights, R loop inside the kernel.
    out = resnet_forward(
        x, raw_params, widths=widths,
        use_attention=True, final_scale=True, final_tanh=True,
        batch_tile=batch_tile)
    out = jax.block_until_ready(out)
    assert out.shape == (B, widths[0]), out.shape
    err = float(jnp.max(jnp.abs(out - ref)))
    assert jnp.allclose(out, ref, atol=1e-4, rtol=1e-4), err

    # Also exercise the large-D weight-streaming path for correctness.
    out_s = resnet_forward(
        x, raw_params, widths=widths,
        use_attention=True, final_scale=True, final_tanh=True,
        batch_tile=batch_tile, weight_resident=False)
    out_s = jax.block_until_ready(out_s)
    err_s = float(jnp.max(jnp.abs(out_s - ref)))
    assert jnp.allclose(out_s, ref, atol=1e-4, rtol=1e-4), err_s

    print("KERNEL_OK")
</pallas_src>

<mosaic_0001>
module attributes {stable_mosaic.version = 11 : i64} {
  func.func @_resnet_resident_kernel(%arg0: i32, %arg1: memref<32x512xf32, #tpu.memory_space<vmem>>, %arg2: memref<2x32x1xf32, #tpu.memory_space<vmem>>, %arg3: memref<2x64x32xf32, #tpu.memory_space<vmem>>, %arg4: memref<2x64x1xf32, #tpu.memory_space<vmem>>, %arg5: memref<2x64x1xf32, #tpu.memory_space<vmem>>, %arg6: memref<2x32x64xf32, #tpu.memory_space<vmem>>, %arg7: memref<2x32x1xf32, #tpu.memory_space<vmem>>, %arg8: memref<2x32x32xf32, #tpu.memory_space<vmem>>, %arg9: memref<2x32x1xf32, #tpu.memory_space<vmem>>, %arg10: memref<32x1xf32, #tpu.memory_space<vmem>>, %arg11: memref<32x512xf32, #tpu.memory_space<vmem>>) attributes {dimension_semantics = [#tpu.dimension_semantics<parallel>], iteration_bounds = array<i64: 2>, scalar_prefetch = 0 : i64, scratch_operands = 0 : i64, tpu.core_type = #tpu.core_type<tc>, window_params = [{transform_indices = @transform_0, window_bounds = array<i64: 32, 512>}, {pipeline_mode = #tpu.pipeline_mode<synchronous>, transform_indices = @transform_1, window_bounds = array<i64: 2, 32, 1>}, {pipeline_mode = #tpu.pipeline_mode<synchronous>, transform_indices = @transform_2, window_bounds = array<i64: 2, 64, 32>}, {pipeline_mode = #tpu.pipeline_mode<synchronous>, transform_indices = @transform_3, window_bounds = array<i64: 2, 64, 1>}, {pipeline_mode = #tpu.pipeline_mode<synchronous>, transform_indices = @transform_4, window_bounds = array<i64: 2, 64, 1>}, {pipeline_mode = #tpu.pipeline_mode<synchronous>, transform_indices = @transform_5, window_bounds = array<i64: 2, 32, 64>}, {pipeline_mode = #tpu.pipeline_mode<synchronous>, transform_indices = @transform_6, window_bounds = array<i64: 2, 32, 1>}, {pipeline_mode = #tpu.pipeline_mode<synchronous>, transform_indices = @transform_7, window_bounds = array<i64: 2, 32, 32>}, {pipeline_mode = #tpu.pipeline_mode<synchronous>, transform_indices = @transform_8, window_bounds = array<i64: 2, 32, 1>}, {pipeline_mode = #tpu.pipeline_mode<synchronous>, transform_indices = @transform_9, window_bounds = array<i64: 32, 1>}, {transform_indices = @transform_10, window_bounds = array<i64: 32, 512>}]} {
    %c0 = arith.constant 0 : index
    %c0_0 = arith.constant 0 : index
    %0 = vector.load %arg1[%c0, %c0_0] : memref<32x512xf32, #tpu.memory_space<vmem>>, vector<32x512xf32>
    %c0_1 = arith.constant 0 : index
    %c0_2 = arith.constant 0 : index
    %c0_3 = arith.constant 0 : index
    %1 = vector.load %arg2[%c0_1, %c0_2, %c0_3] : memref<2x32x1xf32, #tpu.memory_space<vmem>>, vector<1x32x1xf32>
    %2 = vector.shape_cast %1 : vector<1x32x1xf32> to vector<32x1xf32>
    %3 = vector.broadcast %2 : vector<32x1xf32> to vector<32x512xf32>
    %4 = arith.mulf %3, %0 : vector<32x512xf32>
    %5 = arith.negf %4 : vector<32x512xf32>
    %6 = math.exp %5 : vector<32x512xf32>
    %cst = arith.constant 1.000000e+00 : f32
    %7 = vector.broadcast %cst : f32 to vector<32x512xf32>
    %8 = arith.addf %7, %6 : vector<32x512xf32>
    %9 = arith.divf %7, %8 : vector<32x512xf32>
    %10 = arith.mulf %0, %9 : vector<32x512xf32>
    %c0_4 = arith.constant 0 : index
    %c0_5 = arith.constant 0 : index
    %c0_6 = arith.constant 0 : index
    %11 = vector.load %arg3[%c0_4, %c0_5, %c0_6] : memref<2x64x32xf32, #tpu.memory_space<vmem>>, vector<1x64x32xf32>
    %12 = vector.shape_cast %11 : vector<1x64x32xf32> to vector<64x32xf32>
    %cst_7 = arith.constant dense<0.000000e+00> : vector<64x512xf32>
    %13 = tpu.matmul %12, %10, %cst_7 {dimension_numbers = #tpu.dot_dimension_numbers<[1], [0], [0], [1], [0, 0, 1, 1], [], []>} : vector<64x32xf32>, vector<32x512xf32>, vector<64x512xf32> -> vector<64x512xf32>
    %c0_8 = arith.constant 0 : index
    %c0_9 = arith.constant 0 : index
    %c0_10 = arith.constant 0 : index
    %14 = vector.load %arg4[%c0_8, %c0_9, %c0_10] : memref<2x64x1xf32, #tpu.memory_space<vmem>>, vector<1x64x1xf32>
    %15 = vector.shape_cast %14 : vector<1x64x1xf32> to vector<64x1xf32>
    %16 = vector.broadcast %15 : vector<64x1xf32> to vector<64x512xf32>
    %17 = arith.addf %13, %16 : vector<64x512xf32>
    %c0_11 = arith.constant 0 : index
    %c0_12 = arith.constant 0 : index
    %c0_13 = arith.constant 0 : index
    %18 = vector.load %arg5[%c0_11, %c0_12, %c0_13] : memref<2x64x1xf32, #tpu.memory_space<vmem>>, vector<1x64x1xf32>
    %19 = vector.shape_cast %18 : vector<1x64x1xf32> to vector<64x1xf32>
    %20 = vector.broadcast %19 : vector<64x1xf32> to vector<64x512xf32>
    %21 = arith.mulf %20, %17 : vector<64x512xf32>
    %22 = arith.negf %21 : vector<64x512xf32>
    %23 = math.exp %22 : vector<64x512xf32>
    %cst_14 = arith.constant 1.000000e+00 : f32
    %24 = vector.broadcast %cst_14 : f32 to vector<64x512xf32>
    %25 = arith.addf %24, %23 : vector<64x512xf32>
    %26 = arith.divf %24, %25 : vector<64x512xf32>
    %27 = arith.mulf %17, %26 : vector<64x512xf32>
    %c0_15 = arith.constant 0 : index
    %c0_16 = arith.constant 0 : index
    %c0_17 = arith.constant 0 : index
    %28 = vector.load %arg6[%c0_15, %c0_16, %c0_17] : memref<2x32x64xf32, #tpu.memory_space<vmem>>, vector<1x32x64xf32>
    %29 = vector.shape_cast %28 : vector<1x32x64xf32> to vector<32x64xf32>
    %cst_18 = arith.constant dense<0.000000e+00> : vector<32x512xf32>
    %30 = tpu.matmul %29, %27, %cst_18 {dimension_numbers = #tpu.dot_dimension_numbers<[1], [0], [0], [1], [0, 0, 1, 1], [], []>} : vector<32x64xf32>, vector<64x512xf32>, vector<32x512xf32> -> vector<32x512xf32>
    %c0_19 = arith.constant 0 : index
    %c0_20 = arith.constant 0 : index
    %c0_21 = arith.constant 0 : index
    %31 = vector.load %arg7[%c0_19, %c0_20, %c0_21] : memref<2x32x1xf32, #tpu.memory_space<vmem>>, vector<1x32x1xf32>
    %32 = vector.shape_cast %31 : vector<1x32x1xf32> to vector<32x1xf32>
    %33 = vector.broadcast %32 : vector<32x1xf32> to vector<32x512xf32>
    %34 = arith.addf %30, %33 : vector<32x512xf32>
    %35 = arith.addf %0, %34 : vector<32x512xf32>
    %cst_22 = arith.constant 0.707106769 : f32
    %36 = vector.broadcast %cst_22 : f32 to vector<32x512xf32>
    %37 = arith.mulf %35, %36 : vector<32x512xf32>
    %c0_23 = arith.constant 0 : index
    %c0_24 = arith.constant 0 : index
    %c0_25 = arith.constant 0 : index
    %38 = vector.load %arg8[%c0_23, %c0_24, %c0_25] : memref<2x32x32xf32, #tpu.memory_space<vmem>>, vector<1x32x32xf32>
    %39 = vector.shape_cast %38 : vector<1x32x32xf32> to vector<32x32xf32>
    %cst_26 = arith.constant dense<0.000000e+00> : vector<32x512xf32>
    %40 = tpu.matmul %39, %37, %cst_26 {dimension_numbers = #tpu.dot_dimension_numbers<[1], [0], [0], [1], [0, 0, 1, 1], [], []>} : vector<32x32xf32>, vector<32x512xf32>, vector<32x512xf32> -> vector<32x512xf32>
    %c0_27 = arith.constant 0 : index
    %c0_28 = arith.constant 0 : index
    %c0_29 = arith.constant 0 : index
    %41 = vector.load %arg9[%c0_27, %c0_28, %c0_29] : memref<2x32x1xf32, #tpu.memory_space<vmem>>, vector<1x32x1xf32>
    %42 = vector.shape_cast %41 : vector<1x32x1xf32> to vector<32x1xf32>
    %43 = vector.broadcast %42 : vector<32x1xf32> to vector<32x512xf32>
    %44 = arith.addf %40, %43 : vector<32x512xf32>
    %c1 = arith.constant 1 : index
    %c0_30 = arith.constant 0 : index
    %c0_31 = arith.constant 0 : index
    %45 = vector.load %arg2[%c1, %c0_30, %c0_31] : memref<2x32x1xf32, #tpu.memory_space<vmem>>, vector<1x32x1xf32>
    %46 = vector.shape_cast %45 : vector<1x32x1xf32> to vector<32x1xf32>
    %47 = vector.broadcast %46 : vector<32x1xf32> to vector<32x512xf32>
    %48 = arith.mulf %47, %44 : vector<32x512xf32>
    %49 = arith.negf %48 : vector<32x512xf32>
    %50 = math.exp %49 : vector<32x512xf32>
    %cst_32 = arith.constant 1.000000e+00 : f32
    %51 = vector.broadcast %cst_32 : f32 to vector<32x512xf32>
    %52 = arith.addf %51, %50 : vector<32x512xf32>
    %53 = arith.divf %51, %52 : vector<32x512xf32>
    %54 = arith.mulf %44, %53 : vector<32x512xf32>
    %c1_33 = arith.constant 1 : index
    %c0_34 = arith.constant 0 : index
    %c0_35 = arith.constant 0 : index
    %55 = vector.load %arg3[%c1_33, %c0_34, %c0_35] : memref<2x64x32xf32, #tpu.memory_space<vmem>>, vector<1x64x32xf32>
    %56 = vector.shape_cast %55 : vector<1x64x32xf32> to vector<64x32xf32>
    %cst_36 = arith.constant dense<0.000000e+00> : vector<64x512xf32>
    %57 = tpu.matmul %56, %54, %cst_36 {dimension_numbers = #tpu.dot_dimension_numbers<[1], [0], [0], [1], [0, 0, 1, 1], [], []>} : vector<64x32xf32>, vector<32x512xf32>, vector<64x512xf32> -> vector<64x512xf32>
    %c1_37 = arith.constant 1 : index
    %c0_38 = arith.constant 0 : index
    %c0_39 = arith.constant 0 : index
    %58 = vector.load %arg4[%c1_37, %c0_38, %c0_39] : memref<2x64x1xf32, #tpu.memory_space<vmem>>, vector<1x64x1xf32>
    %59 = vector.shape_cast %58 : vector<1x64x1xf32> to vector<64x1xf32>
    %60 = vector.broadcast %59 : vector<64x1xf32> to vector<64x512xf32>
    %61 = arith.addf %57, %60 : vector<64x512xf32>
    %c1_40 = arith.constant 1 : index
    %c0_41 = arith.constant 0 : index
    %c0_42 = arith.constant 0 : index
    %62 = vector.load %arg5[%c1_40, %c0_41, %c0_42] : memref<2x64x1xf32, #tpu.memory_space<vmem>>, vector<1x64x1xf32>
    %63 = vector.shape_cast %62 : vector<1x64x1xf32> to vector<64x1xf32>
    %64 = vector.broadcast %63 : vector<64x1xf32> to vector<64x512xf32>
    %65 = arith.mulf %64, %61 : vector<64x512xf32>
    %66 = arith.negf %65 : vector<64x512xf32>
    %67 = math.exp %66 : vector<64x512xf32>
    %cst_43 = arith.constant 1.000000e+00 : f32
    %68 = vector.broadcast %cst_43 : f32 to vector<64x512xf32>
    %69 = arith.addf %68, %67 : vector<64x512xf32>
    %70 = arith.divf %68, %69 : vector<64x512xf32>
    %71 = arith.mulf %61, %70 : vector<64x512xf32>
    %c1_44 = arith.constant 1 : index
    %c0_45 = arith.constant 0 : index
    %c0_46 = arith.constant 0 : index
    %72 = vector.load %arg6[%c1_44, %c0_45, %c0_46] : memref<2x32x64xf32, #tpu.memory_space<vmem>>, vector<1x32x64xf32>
    %73 = vector.shape_cast %72 : vector<1x32x64xf32> to vector<32x64xf32>
    %cst_47 = arith.constant dense<0.000000e+00> : vector<32x512xf32>
    %74 = tpu.matmul %73, %71, %cst_47 {dimension_numbers = #tpu.dot_dimension_numbers<[1], [0], [0], [1], [0, 0, 1, 1], [], []>} : vector<32x64xf32>, vector<64x512xf32>, vector<32x512xf32> -> vector<32x512xf32>
    %c1_48 = arith.constant 1 : index
    %c0_49 = arith.constant 0 : index
    %c0_50 = arith.constant 0 : index
    %75 = vector.load %arg7[%c1_48, %c0_49, %c0_50] : memref<2x32x1xf32, #tpu.memory_space<vmem>>, vector<1x32x1xf32>
    %76 = vector.shape_cast %75 : vector<1x32x1xf32> to vector<32x1xf32>
    %77 = vector.broadcast %76 : vector<32x1xf32> to vector<32x512xf32>
    %78 = arith.addf %74, %77 : vector<32x512xf32>
    %79 = arith.addf %44, %78 : vector<32x512xf32>
    %cst_51 = arith.constant 0.707106769 : f32
    %80 = vector.broadcast %cst_51 : f32 to vector<32x512xf32>
    %81 = arith.mulf %79, %80 : vector<32x512xf32>
    %c1_52 = arith.constant 1 : index
    %c0_53 = arith.constant 0 : index
    %c0_54 = arith.constant 0 : index
    %82 = vector.load %arg8[%c1_52, %c0_53, %c0_54] : memref<2x32x32xf32, #tpu.memory_space<vmem>>, vector<1x32x32xf32>
    %83 = vector.shape_cast %82 : vector<1x32x32xf32> to vector<32x32xf32>
    %cst_55 = arith.constant dense<0.000000e+00> : vector<32x512xf32>
    %84 = tpu.matmul %83, %81, %cst_55 {dimension_numbers = #tpu.dot_dimension_numbers<[1], [0], [0], [1], [0, 0, 1, 1], [], []>} : vector<32x32xf32>, vector<32x512xf32>, vector<32x512xf32> -> vector<32x512xf32>
    %c1_56 = arith.constant 1 : index
    %c0_57 = arith.constant 0 : index
    %c0_58 = arith.constant 0 : index
    %85 = vector.load %arg9[%c1_56, %c0_57, %c0_58] : memref<2x32x1xf32, #tpu.memory_space<vmem>>, vector<1x32x1xf32>
    %86 = vector.shape_cast %85 : vector<1x32x1xf32> to vector<32x1xf32>
    %87 = vector.broadcast %86 : vector<32x1xf32> to vector<32x512xf32>
    %88 = arith.addf %84, %87 : vector<32x512xf32>
    %c0_59 = arith.constant 0 : index
    %c0_60 = arith.constant 0 : index
    %89 = vector.load %arg10[%c0_59, %c0_60] : memref<32x1xf32, #tpu.memory_space<vmem>>, vector<32x1xf32>
    %90 = vector.broadcast %89 : vector<32x1xf32> to vector<32x512xf32>
    %91 = arith.mulf %88, %90 : vector<32x512xf32>
    %92 = math.tanh %91 : vector<32x512xf32>
    %c0_61 = arith.constant 0 : index
    %c0_62 = arith.constant 0 : index
    %93 = vector.load %arg11[%c0_61, %c0_62] : memref<32x512xf32, #tpu.memory_space<vmem>>, vector<32x512xf32>
    tpu.vector_store %arg11[%c0_61, %c0_62], %92 {strides = array<i32>} : memref<32x512xf32, #tpu.memory_space<vmem>>, vector<32x512xf32>,
    return
  }
  func.func @transform_0(%arg0: i32) -> (i32, i32) {
    %c0_i32 = arith.constant 0 : i32
    %c0_i32_0 = arith.constant 0 : i32
    return %c0_i32, %arg0 : i32, i32
  }
  func.func @transform_1(%arg0: i32) -> (i32, i32, i32) {
    %c0_i32 = arith.constant 0 : i32
    %c0_i32_0 = arith.constant 0 : i32
    %c0_i32_1 = arith.constant 0 : i32
    %c0_i32_2 = arith.constant 0 : i32
    return %c0_i32, %c0_i32_0, %c0_i32_1 : i32, i32, i32
  }
  func.func @transform_2(%arg0: i32) -> (i32, i32, i32) {
    %c0_i32 = arith.constant 0 : i32
    %c0_i32_0 = arith.constant 0 : i32
    %c0_i32_1 = arith.constant 0 : i32
    %c0_i32_2 = arith.constant 0 : i32
    return %c0_i32, %c0_i32_0, %c0_i32_1 : i32, i32, i32
  }
  func.func @transform_3(%arg0: i32) -> (i32, i32, i32) {
    %c0_i32 = arith.constant 0 : i32
    %c0_i32_0 = arith.constant 0 : i32
    %c0_i32_1 = arith.constant 0 : i32
    %c0_i32_2 = arith.constant 0 : i32
    return %c0_i32, %c0_i32_0, %c0_i32_1 : i32, i32, i32
  }
  func.func @transform_4(%arg0: i32) -> (i32, i32, i32) {
    %c0_i32 = arith.constant 0 : i32
    %c0_i32_0 = arith.constant 0 : i32
    %c0_i32_1 = arith.constant 0 : i32
    %c0_i32_2 = arith.constant 0 : i32
    return %c0_i32, %c0_i32_0, %c0_i32_1 : i32, i32, i32
  }
  func.func @transform_5(%arg0: i32) -> (i32, i32, i32) {
    %c0_i32 = arith.constant 0 : i32
    %c0_i32_0 = arith.constant 0 : i32
    %c0_i32_1 = arith.constant 0 : i32
    %c0_i32_2 = arith.constant 0 : i32
    return %c0_i32, %c0_i32_0, %c0_i32_1 : i32, i32, i32
  }
  func.func @transform_6(%arg0: i32) -> (i32, i32, i32) {
    %c0_i32 = arith.constant 0 : i32
    %c0_i32_0 = arith.constant 0 : i32
    %c0_i32_1 = arith.constant 0 : i32
    %c0_i32_2 = arith.constant 0 : i32
    return %c0_i32, %c0_i32_0, %c0_i32_1 : i32, i32, i32
  }
  func.func @transform_7(%arg0: i32) -> (i32, i32, i32) {
    %c0_i32 = arith.constant 0 : i32
    %c0_i32_0 = arith.constant 0 : i32
    %c0_i32_1 = arith.constant 0 : i32
    %c0_i32_2 = arith.constant 0 : i32
    return %c0_i32, %c0_i32_0, %c0_i32_1 : i32, i32, i32
  }
  func.func @transform_8(%arg0: i32) -> (i32, i32, i32) {
    %c0_i32 = arith.constant 0 : i32
    %c0_i32_0 = arith.constant 0 : i32
    %c0_i32_1 = arith.constant 0 : i32
    %c0_i32_2 = arith.constant 0 : i32
    return %c0_i32, %c0_i32_0, %c0_i32_1 : i32, i32, i32
  }
  func.func @transform_9(%arg0: i32) -> (i32, i32) {
    %c0_i32 = arith.constant 0 : i32
    %c0_i32_0 = arith.constant 0 : i32
    %c0_i32_1 = arith.constant 0 : i32
    return %c0_i32, %c0_i32_0 : i32, i32
  }
  func.func @transform_10(%arg0: i32) -> (i32, i32) {
    %c0_i32 = arith.constant 0 : i32
    %c0_i32_0 = arith.constant 0 : i32
    return %c0_i32, %arg0 : i32, i32
  }
}

</mosaic_0001>

<bundles_post_ra>
// kernel: tpu_custom_call.1
= control target key start
LH: loop header
LB: loop body
LE: loop exit
PB: predicated region body
PF: predicated region fallthrough
CT: control target
= control target key end

     0   :  { %15 = vsyncpa [#allocation4], 0  ;;  %s5112_s0 = inlined_call_operand.vmem [shape: f32[32,1024], index: 0, kind: input, shape index: {}]   ;;  %s5113_s1 = inlined_call_operand.vmem [shape: f32[2,32,1], index: 1, kind: input, shape index: {}]   ;;  %s5114_s2 = inlined_call_operand.vmem [shape: f32[2,64,32], index: 2, kind: input, shape index: {}]   ;;  %s5115_s3 = inlined_call_operand.vmem [shape: f32[2,64,1], index: 3, kind: input, shape index: {}]   ;;  %s5116_s4 = inlined_call_operand.vmem [shape: f32[2,64,1], index: 4, kind: input, shape index: {}]   ;;  %s5117_s5 = inlined_call_operand.vmem [shape: f32[2,32,64], index: 5, kind: input, shape index: {}]   ;;  %s5118_s6 = inlined_call_operand.vmem [shape: f32[2,32,1], index: 6, kind: input, shape index: {}]   ;;  %s5119_s7 = inlined_call_operand.vmem [shape: f32[2,32,32], index: 7, kind: input, shape index: {}]   ;;  %s5120_s8 = inlined_call_operand.vmem [shape: f32[2,32,1], index: 8, kind: input, shape index: {}]   ;;  %s5121_s9 = inlined_call_operand.vmem [shape: f32[32,1], index: 9, kind: input, shape index: {}]   ;;  %s5122_s10 = inlined_call_operand.hbm [shape: f32[32,1024], index: 10, kind: output, shape index: {}]  }
   0x1   :  { %17 = vsyncpa [#allocation4 + $0x1], 0  ;;  %s4001_s13 = smov 0   ;;  %s4003_s14 = smov 0  }
   0x2   :  { %s4005_s15 = smov 0   ;;  %s4007_s16 = smov 0  }
   0x3 LB: > { %s3049_s17 = sadd.s32 4294967295, %s3938_s16   ;;  %s3050_s18 = sadd.s32 4294967294, %s3938_s16   ;;  %s3938_s16 = sphi %s4007_s16, %s5164_s16   ;;  %s3934_s15 = sphi %s4005_s15, %s5163_s15   ;;  %s3930_s14 = sphi %s4003_s14, %s5162_s14   ;;  %s3926_s13 = sphi %s4001_s13, %s5161_s13  }
   0x4   : > { %s4024_s19 = sadd.s32 1, %s3938_s16   ;;  %s30_s20 = sadd.s32 1, %s3934_s15 }
   0x5   : > { %s27_s21 = ssub.s32 %s3938_s16, %s4024_s19  ;;  %p37_p0 = scmp.ne.s32.totalorder %s3934_s15, %s3930_s14 }
   0x6   : > { %p28_p1 = scmp.eq.s32.totalorder %s27_s21, 0  ;;  %p38_p2 = scmp.eq.s32.totalorder %s3938_s16, 0 }
   0x7   : > { %p256_p3 = scmp.eq.s32.totalorder %s3049_s17, 1  ;;  %p261_p4 = scmp.ne.s32.totalorder %s3930_s14, %s3926_s13 }
   0x8   : > { %s4037_s22 = scalar_select %p28_p1, %s3934_s15, %s30_s20  }
   0x9   : > { %p39_p5 = por %p38_p2, %p37_p0  ;;  %p4039_p6 = por %p256_p3, %p37_p0 }
   0xa   : > { %p262_p7 = scmp.eq.s32.totalorder %s3050_s18, 1  ;;  %p3052_p9 = scmp.ge.s32.totalorder %s3938_s16, 2 }
   0xc   : > { %p4043_p8 = por %p262_p7, %p261_p4  ;;  %305 = sbr.rel (%p3052_p9) target bundleno = 31 (0x1f), region = 52 }
  0x13   : > { %308 = sbr.rel (!%p39_p5) target bundleno = 31 (0x1f), region = 56  ;;  %s310_s25 = sand.u32 (%p39_p5), 1, %s3934_s15  }
  0x14   : > { %s3268_s26 = sshll.u32 (%p39_p5), %s3938_s16, 5  ;;  %s3053_s27 = sshll.u32 (%p39_p5), %s310_s25, 7 }
  0x15   : > { %s4055_s30 = scalar_lea.vmem (%p39_p5), %s5112_s0, %s3268_s26  ;;  %s312_s11 = scalar_lea.vmem (%p39_p5), [#allocation2], %s3053_s27 }
  0x16   : > { %v328_v0 = vld [vmem:[%s4055_s30] sm:$0xff] (%p39_p5)  ;;  %v330_v1 = vld [vmem:[%s4055_s30 + $0x8] sm:$0xff] (%p39_p5)  ;;  %v332_v2 = vld [vmem:[%s4055_s30 + $0x10] sm:$0xff] (%p39_p5) }
  0x17   : > { %329 = vst [vmem:[%s312_s11] sm:$0xff] (%p39_p5), %v328_v0  ;;  %331 = vst [vmem:[%s312_s11 + $0x8] sm:$0xff] (%p39_p5), %v330_v1  ;;  %v334_v3 = vld [vmem:[%s4055_s30 + $0x18] sm:$0xff] (%p39_p5)  ;;  %v336_v4 = vld [vmem:[%s4055_s30 + $0x40] sm:$0xff] (%p39_p5) }
  0x18   : > { %333 = vst [vmem:[%s312_s11 + $0x10] sm:$0xff] (%p39_p5), %v332_v2  ;;  %v338_v5 = vld [vmem:[%s4055_s30 + $0x48] sm:$0xff] (%p39_p5)  ;;  %335 = vst [vmem:[%s312_s11 + $0x18] sm:$0xff] (%p39_p5), %v334_v3  ;;  %v340_v6 = vld [vmem:[%s4055_s30 + $0x50] sm:$0xff] (%p39_p5) }
  0x19   : > { %337 = vst [vmem:[%s312_s11 + $0x20] sm:$0xff] (%p39_p5), %v336_v4  ;;  %339 = vst [vmem:[%s312_s11 + $0x28] sm:$0xff] (%p39_p5), %v338_v5  ;;  %v342_v7 = vld [vmem:[%s4055_s30 + $0x58] sm:$0xff] (%p39_p5)  ;;  %v344_v8 = vld [vmem:[%s4055_s30 + $0x80] sm:$0xff] (%p39_p5) }
  0x1a   : > { %341 = vst [vmem:[%s312_s11 + $0x30] sm:$0xff] %v340_v6  ;;  %343 = vst [vmem:[%s312_s11 + $0x38] sm:$0xff] %v342_v7  ;;  %v346_v9 = vld [vmem:[%s4055_s30 + $0x88] sm:$0xff]  ;;  %v348_v10 = vld [vmem:[%s4055_s30 + $0x90] sm:$0xff] }
  0x1b   : > { %345 = vst [vmem:[%s312_s11 + $0x40] sm:$0xff] %v344_v8  ;;  %v350_v11 = vld [vmem:[%s4055_s30 + $0x98] sm:$0xff]  ;;  %347 = vst [vmem:[%s312_s11 + $0x48] sm:$0xff] %v346_v9  ;;  %v352_v12 = vld [vmem:[%s4055_s30 + $0xc0] sm:$0xff] }
  0x1c   : > { %349 = vst [vmem:[%s312_s11 + $0x50] sm:$0xff] %v348_v10  ;;  %351 = vst [vmem:[%s312_s11 + $0x58] sm:$0xff] %v350_v11  ;;  %v354_v13 = vld [vmem:[%s4055_s30 + $0xc8] sm:$0xff]  ;;  %v356_v14 = vld [vmem:[%s4055_s30 + $0xd0] sm:$0xff] }
  0x1d   : > { %353 = vst [vmem:[%s312_s11 + $0x60] sm:$0xff] %v352_v12  ;;  %355 = vst [vmem:[%s312_s11 + $0x68] sm:$0xff] %v354_v13  ;;  %v358_v15 = vld [vmem:[%s4055_s30 + $0xd8] sm:$0xff] }
  0x1e   : > { %357 = vst [vmem:[%s312_s11 + $0x70] sm:$0xff] %v356_v14  ;;  %359 = vst [vmem:[%s312_s11 + $0x78] sm:$0xff] %v358_v15 }
  0x1f PF: > { %p3056_p10 = scmp.ge.s32.totalorder %s3938_s16, 1  ;;  %p364_p11 = scmp.lt.s32.totalorder %s3938_s16, 3 }
  0x21   : > { %p365_p12 = pnand %p3056_p10, %p364_p11 }
  0x23   : > { %368 = sbr.rel (%p365_p12) target bundleno = 1842 (0x732), region = 79 }
  0x2a   : > { %v428_v16 = vld [vmem:[%s5113_s1 + $0x10] sm:$0xff]  ;;  %v426_v17 = vld [vmem:[%s5113_s1] sm:$0xff]  ;;  %v3940_v18 = vmov 0   ;;  %v429_v19 = vld [vmem:[%s5113_s1 + $0x18] sm:$0xff]  ;;  %v5123_v53 = vmov 0.0   ;;  %s371_s11 = sand.u32 1, %s3930_s14  }
  0x2b   : > { %3443 = vset.pattern.permute.xlu1 %v3940_v18  ;;  %3442 = vset.pattern.permute.xlu0 %v3940_v18  ;;  %v427_v20 = vld [vmem:[%s5113_s1 + $0x8] sm:$0xff]  ;;  %v586_v22 = vld [vmem:[%s5115_s3] sm:$0xff]  ;;  %v589_v25 = vld [vmem:[%s5115_s3 + $0x18] sm:$0xff]  ;;  %s4260_s12 = sshll.u32 %s371_s11, 7  ;;  %vm634_vm0 = vcmask 261120   ;;  %vm1217_vm1 = vcmask 523264  }
  0x2c   : > { %442 = vperm.xlu1 %3443, %v428_v16   ;;  %432 = vperm.xlu0 %3442, %v426_v17   ;;  %v587_v21 = vld [vmem:[%s5115_s3 + $0x8] sm:$0xff]  ;;  %v885_v24 = vld [vmem:[%s5116_s4] sm:$0xff]  ;;  %v588_v26 = vld [vmem:[%s5115_s3 + $0x10] sm:$0xff]  ;;  %s4263_s18 = scalar_lea.vmem [#allocation2], %s4260_s12  ;;  %s5040_s26 = scalar_lea.vmem [#allocation3], %s4260_s12 }
  0x2d   : > { %v886_v23 = vld [vmem:[%s5116_s4 + $0x8] sm:$0xff]  ;;  %v888_v27 = vld [vmem:[%s5116_s4 + $0x18] sm:$0xff]  ;;  %v887_v28 = vld [vmem:[%s5116_s4 + $0x10] sm:$0xff]  ;;  %723 = vmatprep.mubr.f32.mxu0 %v5123_v53  ;;  %836 = vmatprep.mubr.f32.mxu1 %v5123_v53  ;;  %s3269_s12 = sshll.u32 %s3049_s17, 9  ;;  %s2982_s27 = sshll.u32 %s5040_s26, 4  ;;  %s5063_s27 = int_to_ptr.vmem [resolvable:$true] %s2982_s27 }
  0x2e   : > { %v591_v29 = vld [vmem:[%s5115_s3 + $0x28] sm:$0xff]  ;;  %v590_v30 = vld [vmem:[%s5115_s3 + $0x20] sm:$0xff]  ;;  %v593_v33 = vld [vmem:[%s5115_s3 + $0x38] sm:$0xff]  ;;  %s5060_s30 = scalar_lea.hbm %s5122_s10, %s3269_s12  ;;  %s5070_s17 = scalar_lea.sflag [#allocation4], %s371_s11 }
  0x2f   : > { %v890_v31 = vld [vmem:[%s5116_s4 + $0x28] sm:$0xff]  ;;  %v889_v32 = vld [vmem:[%s5116_s4 + $0x20] sm:$0xff]  ;;  %v592_v34 = vld [vmem:[%s5115_s3 + $0x30] sm:$0xff]  ;;  %s3876_s20 = scalar_lea.vmem %s5063_s27, 2048  ;;  %s3942_s21 = smov [#allocation3]  }
  0x30   : > { %447 = vperm.xlu1 %3443, %v429_v19   ;;  %437 = vperm.xlu0 %3442, %v427_v20   ;;  %v892_v35 = vld [vmem:[%s5116_s4 + $0x38] sm:$0xff]  ;;  %v891_v36 = vld [vmem:[%s5116_s4 + $0x30] sm:$0xff]  ;;  %v1194_v37 = vld [vmem:[%s5118_s6 + $0x8] sm:$0xff]  ;;  %p3877_p13 = scmp.ne.s32.totalorder %s5063_s27, %s3876_s20 }
  0x31   : > { %v1193_v38 = vld [vmem:[%s5118_s6] sm:$0xff]  ;;  %v1196_v39 = vld [vmem:[%s5118_s6 + $0x18] sm:$0xff]  ;;  %v1195_v40 = vld [vmem:[%s5118_s6 + $0x10] sm:$0xff] }
  0x32   : > { %v1445_v41 = vld [vmem:[%s5120_s8 + $0x8] sm:$0xff]  ;;  %v1444_v42 = vld [vmem:[%s5120_s8] sm:$0xff]  ;;  %v1447_v45 = vld [vmem:[%s5120_s8 + $0x18] sm:$0xff]  ;;  %p3878_p0 = pnand %p3877_p13, %p4039_p6 }
  0x33   : > { %v3140_v43 = vld [vmem:[%s5113_s1 + $0x28] sm:$0xff]  ;;  %v3139_v44 = vld [vmem:[%s5113_s1 + $0x20] sm:$0xff]  ;;  %v1446_v46 = vld [vmem:[%s5120_s8 + $0x10] sm:$0xff] }
  0x34   : > { %601 = vperm.xlu1 %3443, %v587_v21   ;;  %596 = vperm.xlu0 %3442, %v586_v22   ;;  %v3142_v47 = vld [vmem:[%s5113_s1 + $0x38] sm:$0xff]  ;;  %v3141_v48 = vld [vmem:[%s5113_s1 + $0x30] sm:$0xff]  ;;  %v3168_v49 = vld [vmem:[%s5115_s3 + $0x48] sm:$0xff]  ;;  %p3879_p1 = pneg %p3878_p0 }
  0x35   : > { %v3167_v50 = vld [vmem:[%s5115_s3 + $0x40] sm:$0xff]  ;;  %v3192_v51 = vld [vmem:[%s5116_s4 + $0x48] sm:$0xff]  ;;  %v3170_v54 = vld [vmem:[%s5115_s3 + $0x58] sm:$0xff] }
  0x36   : > { %v3191_v52 = vld [vmem:[%s5116_s4 + $0x40] sm:$0xff]  ;;  %v3169_v55 = vld [vmem:[%s5115_s3 + $0x50] sm:$0xff]  ;;  %v3194_v56 = vld [vmem:[%s5116_s4 + $0x58] sm:$0xff] }
  0x37   : > { %v3193_v57 = vld [vmem:[%s5116_s4 + $0x50] sm:$0xff]  ;;  %v3172_v58 = vld [vmem:[%s5115_s3 + $0x68] sm:$0xff]  ;;  %v3171_v59 = vld [vmem:[%s5115_s3 + $0x60] sm:$0xff] }
  0x38   : > { %900 = vperm.xlu1 %3443, %v886_v23   ;;  %895 = vperm.xlu0 %3442, %v885_v24   ;;  %v3196_v60 = vld [vmem:[%s5116_s4 + $0x68] sm:$0xff]  ;;  %v3195_v61 = vld [vmem:[%s5116_s4 + $0x60] sm:$0xff]  ;;  %v3174_v62 = vld [vmem:[%s5115_s3 + $0x78] sm:$0xff] }
  0x39   : > { %v3173_v63 = vld [vmem:[%s5115_s3 + $0x70] sm:$0xff]  ;;  %v3198_v0 = vld [vmem:[%s5116_s4 + $0x78] sm:$0xff]  ;;  %v3236_v2 = vld [vmem:[%s5118_s6 + $0x28] sm:$0xff] }
  0x3a   : > { %v3197_v1 = vld [vmem:[%s5116_s4 + $0x70] sm:$0xff]  ;;  %v3235_v3 = vld [vmem:[%s5118_s6 + $0x20] sm:$0xff]  ;;  %v3238_v4 = vld [vmem:[%s5118_s6 + $0x38] sm:$0xff] }
  0x3b   : > { %v3237_v5 = vld [vmem:[%s5118_s6 + $0x30] sm:$0xff]  ;;  %v3252_v6 = vld [vmem:[%s5120_s8 + $0x28] sm:$0xff]  ;;  %v3251_v7 = vld [vmem:[%s5120_s8 + $0x20] sm:$0xff] }
  0x3c   : > { %611 = vperm.xlu1 %3443, %v589_v25   ;;  %606 = vperm.xlu0 %3442, %v588_v26   ;;  %v3254_v8 = vld [vmem:[%s5120_s8 + $0x38] sm:$0xff]  ;;  %v3253_v9 = vld [vmem:[%s5120_s8 + $0x30] sm:$0xff]  ;;  %v2897_v10 = vld [vmem:[%s5121_s9 + $0x8] sm:$0xff] }
  0x3d   : > { %v2896_v11 = vld [vmem:[%s5121_s9] sm:$0xff]  ;;  %v2899_v12 = vld [vmem:[%s5121_s9 + $0x18] sm:$0xff]  ;;  %v2898_v13 = vld [vmem:[%s5121_s9 + $0x10] sm:$0xff] }
  0x3e   : > { %v4266_v14 = vld [vmem:[%s4263_s18 + $0x40] sm:$0xff]  ;;  %v4269_v16 = vld [vmem:[%s4263_s18 + $0x48] sm:$0xff]  ;;  %v4273_v19 = vld [vmem:[%s4263_s18 + $0x50] sm:$0xff] }
  0x3f   : > { %v4277_v21 = vld [vmem:[%s4263_s18 + $0x58] sm:$0xff]  ;;  %v4280_v23 = vld [vmem:[%s4263_s18] sm:$0xff]  ;;  %v4284_v25 = vld [vmem:[%s4263_s18 + $0x10] sm:$0xff] }
  0x40   : > { %910 = vperm.xlu1 %3443, %v888_v27   ;;  %905 = vperm.xlu0 %3442, %v887_v28  }
  0x44   : > { %621 = vperm.xlu1 %3443, %v591_v29   ;;  %616 = vperm.xlu0 %3442, %v590_v30   ;;  %v4288_v29 = vld [vmem:[%s4263_s18 + $0x20] sm:$0xff] }
  0x48   : > { %920 = vperm.xlu1 %3443, %v890_v31   ;;  %915 = vperm.xlu0 %3442, %v889_v32   ;;  %v4292_v32 = vld [vmem:[%s4263_s18 + $0x68] sm:$0xff] }
  0x4c   : > { %631 = vperm.xlu1 %3443, %v593_v33   ;;  %626 = vperm.xlu0 %3442, %v592_v34   ;;  %v4296_v34 = vld [vmem:[%s4263_s18 + $0x30] sm:$0xff] }
  0x50   : > { %930 = vperm.xlu1 %3443, %v892_v35   ;;  %925 = vperm.xlu0 %3442, %v891_v36  }
  0x54   : > { %1204 = vperm.xlu1 %3443, %v1194_v37   ;;  %1199 = vperm.xlu0 %3442, %v1193_v38   ;;  %v4300_v37 = vld [vmem:[%s4263_s18 + $0x8] sm:$0xff] }
  0x58   : > { %1214 = vperm.xlu1 %3443, %v1196_v39   ;;  %1209 = vperm.xlu0 %3442, %v1195_v40   ;;  %v4303_v39 = vld [vmem:[%s4263_s18 + $0x60] sm:$0xff] }
  0x5c   : > { %1455 = vperm.xlu1 %3443, %v1445_v41   ;;  %1450 = vperm.xlu0 %3442, %v1444_v42  }
  0x60   : > { %1670 = vperm.xlu1 %3443, %v3140_v43   ;;  %1665 = vperm.xlu0 %3442, %v3139_v44   ;;  %v4308_v44 = vld [vmem:[%s4263_s18 + $0x78] sm:$0xff] }
  0x64   : > { %1465 = vperm.xlu1 %3443, %v1447_v45   ;;  %1460 = vperm.xlu0 %3442, %v1446_v46   ;;  %v4312_v46 = vld [vmem:[%s4263_s18 + $0x70] sm:$0xff] }
  0x68   : > { %1680 = vperm.xlu1 %3443, %v3142_v47   ;;  %1675 = vperm.xlu0 %3442, %v3141_v48  }
  0x6c   : > { %1836 = vperm.xlu1 %3443, %v3168_v49   ;;  %1831 = vperm.xlu0 %3442, %v3167_v50  }
  0x70   : > { %2135 = vperm.xlu1 %3443, %v3192_v51   ;;  %2130 = vperm.xlu0 %3442, %v3191_v52   ;;  %v4317_v52 = vld [vmem:[%s4263_s18 + $0x28] sm:$0xff] }
  0x74   : > { %1846 = vperm.xlu1 %3443, %v3170_v54   ;;  %1841 = vperm.xlu0 %3442, %v3169_v55  }
  0x78   : > { %2145 = vperm.xlu1 %3443, %v3194_v56   ;;  %2140 = vperm.xlu0 %3442, %v3193_v57   ;;  %v4321_v57 = vld [vmem:[%s4263_s18 + $0x18] sm:$0xff] }
  0x7c   : > { %1856 = vperm.xlu1 %3443, %v3172_v58   ;;  %1851 = vperm.xlu0 %3442, %v3171_v59  }
  0x80   : > { %2155 = vperm.xlu1 %3443, %v3196_v60   ;;  %2150 = vperm.xlu0 %3442, %v3195_v61   ;;  %v4325_v60 = vld [vmem:[%s4263_s18 + $0x38] sm:$0xff] }
  0x84   : > { %1866 = vperm.xlu1 %3443, %v3174_v62   ;;  %1861 = vperm.xlu0 %3442, %v3173_v63  }
  0x88   : > { %2165 = vperm.xlu1 %3443, %v3198_v0   ;;  %2160 = vperm.xlu0 %3442, %v3197_v1  }
  0x8c   : > { %2441 = vperm.xlu1 %3443, %v3236_v2   ;;  %2436 = vperm.xlu0 %3442, %v3235_v3  }
  0x90   : > { %2451 = vperm.xlu1 %3443, %v3238_v4   ;;  %2446 = vperm.xlu0 %3442, %v3237_v5  }
  0x94   : > { %2693 = vperm.xlu1 %3443, %v3252_v6   ;;  %2688 = vperm.xlu0 %3442, %v3251_v7  }
  0x98   : > { %2703 = vperm.xlu1 %3443, %v3254_v8   ;;  %2698 = vperm.xlu0 %3442, %v3253_v9  }
  0x9c   : > { %2907 = vperm.xlu1 %3443, %v2897_v10   ;;  %2902 = vperm.xlu0 %3442, %v2896_v11  }
  0xa0   : > { %2917 = vperm.xlu1 %3443, %v2899_v12   ;;  %2912 = vperm.xlu0 %3442, %v2898_v13  }
  0xab   : > { %v443_v15 = vpop.permute.xlu1 %442  ;;  %v433_v18 = vpop.permute.xlu0 %432 }
  0xac   : > { %v458_v17 = vmul.f32 %v443_v15, %v4266_v14  ;;  %v459_v20 = vmul.f32 %v443_v15, %v4269_v16  ;;  %v460_v24 = vmul.f32 %v443_v15, %v4273_v19  ;;  %v461_v26 = vmul.f32 %v443_v15, %v4277_v21 }
  0xad   : > { %v450_v30 = vmul.f32 %v433_v18, %v4280_v23  ;;  %v452_v33 = vmul.f32 %v433_v18, %v4284_v25  ;;  %v451_v45 = vmul.f32 %v433_v18, %v4300_v37  ;;  %v453_v0 = vmul.f32 %v433_v18, %v4321_v57 }
  0xae   : > { %v3067_v22 = vmul.f32 -1.442695, %v458_v17  ;;  %v3068_v27 = vmul.f32 -1.442695, %v459_v20  ;;  %v3069_v35 = vmul.f32 -1.442695, %v460_v24 }
  0xaf   : > { %v438_v28 = vpop.permute.xlu0 %437  ;;  %v448_v31 = vpop.permute.xlu1 %447  ;;  %v3070_v38 = vmul.f32 -1.442695, %v461_v26  ;;  %v3059_v41 = vmul.f32 -1.442695, %v450_v30  ;;  %v3061_v43 = vmul.f32 -1.442695, %v452_v33 }
  0xb0   : > { %3444 = vpow2.f32 %v3067_v22  ;;  %v454_v36 = vmul.f32 %v438_v28, %v4288_v29  ;;  %v463_v40 = vmul.f32 %v448_v31, %v4292_v32  ;;  %v456_v42 = vmul.f32 %v438_v28, %v4296_v34 }
  0xb1   : > { %3446 = vpow2.f32 %v3068_v27  ;;  %v462_v47 = vmul.f32 %v448_v31, %v4303_v39  ;;  %v465_v50 = vmul.f32 %v448_v31, %v4308_v44  ;;  %v464_v54 = vmul.f32 %v448_v31, %v4312_v46 }
  0xb2   : > { %3448 = vpow2.f32 %v3069_v35  ;;  %v3063_v48 = vmul.f32 -1.442695, %v454_v36  ;;  %v3072_v49 = vmul.f32 -1.442695, %v463_v40  ;;  %v3065_v51 = vmul.f32 -1.442695, %v456_v42 }
  0xb3   : > { %3450 = vpow2.f32 %v3070_v38  ;;  %v3060_v55 = vmul.f32 -1.442695, %v451_v45  ;;  %v3071_v56 = vmul.f32 -1.442695, %v462_v47  ;;  %v455_v59 = vmul.f32 %v438_v28, %v4317_v52 }
  0xb4   : > { %3452 = vpow2.f32 %v3059_v41  ;;  %v3074_v61 = vmul.f32 -1.442695, %v465_v50  ;;  %v3073_v63 = vmul.f32 -1.442695, %v464_v54  ;;  %v457_v2 = vmul.f32 %v438_v28, %v4325_v60 }
  0xb5   : > { %3454 = vpow2.f32 %v3061_v43  ;;  %v3064_v3 = vmul.f32 -1.442695, %v455_v59  ;;  %v3062_v7 = vmul.f32 -1.442695, %v453_v0 }
  0xb6   : > { %3456 = vpow2.f32 %v3063_v48  ;;  %v3066_v9 = vmul.f32 -1.442695, %v457_v2 }
  0xb7   : > { %3458 = vpow2.f32 %v3072_v49 }
  0xb8   : > { %3460 = vpow2.f32 %v3065_v51 }
  0xb9   : > { %3462 = vpow2.f32 %v3060_v55 }
  0xba   : > { %v3445_v58 = vpop.eup %3444  ;;  %3464 = vpow2.f32 %v3071_v56 }
  0xbb   : > { %v3447_v62 = vpop.eup %3446  ;;  %v522_v1 = vadd.f32 1.0, %v3445_v58  ;;  %3466 = vpow2.f32 %v3074_v61 }
  0xbc   : > { %v3449_v4 = vpop.eup %3448  ;;  %v523_v5 = vadd.f32 1.0, %v3447_v62  ;;  %3468 = vpow2.f32 %v3073_v63 }
  0xbd   : > { %v3451_v6 = vpop.eup %3450  ;;  %3470 = vrcp.f32 %v522_v1  ;;  %v524_v11 = vadd.f32 1.0, %v3449_v4 }
  0xbe   : > { %v3453_v8 = vpop.eup %3452  ;;  %3472 = vpow2.f32 %v3064_v3  ;;  %v525_v13 = vadd.f32 1.0, %v3451_v6 }
  0xbf   : > { %v3455_v10 = vpop.eup %3454  ;;  %3474 = vrcp.f32 %v523_v5  ;;  %v514_v17 = vadd.f32 1.0, %v3453_v8 }
  0xc0   : > { %v3457_v12 = vpop.eup %3456  ;;  %3476 = vpow2.f32 %v3062_v7  ;;  %v516_v20 = vadd.f32 1.0, %v3455_v10 }
  0xc1   : > { %v3459_v15 = vpop.eup %3458  ;;  %3478 = vpow2.f32 %v3066_v9  ;;  %v518_v24 = vadd.f32 1.0, %v3457_v12 }
  0xc2   : > { %v3461_v18 = vpop.eup %3460  ;;  %3480 = vrcp.f32 %v524_v11  ;;  %v527_v27 = vadd.f32 1.0, %v3459_v15 }
  0xc3   : > { %v3463_v22 = vpop.eup %3462  ;;  %3482 = vrcp.f32 %v525_v13  ;;  %v520_v28 = vadd.f32 1.0, %v3461_v18 }
  0xc4   : > { %v3465_v26 = vpop.eup %3464  ;;  %3484 = vrcp.f32 %v514_v17  ;;  %v515_v31 = vadd.f32 1.0, %v3463_v22  ;;  %v584_v22 = vld [vmem:[%s5114_s2 + $0x30] sm:$0xff] }
  0xc5   : > { %v3467_v30 = vpop.eup %3466  ;;  %3486 = vrcp.f32 %v516_v20  ;;  %v526_v35 = vadd.f32 1.0, %v3465_v26  ;;  %v583_v20 = vld [vmem:[%s5114_s2 + $0x28] sm:$0xff]  ;;  %v597_v26 = vpop.permute.xlu0 %596 }
  0xc6   : > { %v3469_v33 = vpop.eup %3468  ;;  %3488 = vrcp.f32 %v518_v24  ;;  %v529_v40 = vadd.f32 1.0, %v3467_v30  ;;  %v585_v24 = vld [vmem:[%s5114_s2 + $0x38] sm:$0xff] }
  0xc7   : > { %v3471_v36 = vpop.eup %3470  ;;  %3490 = vrcp.f32 %v527_v27  ;;  %v528_v47 = vadd.f32 1.0, %v3469_v33  ;;  %v602_v27 = vpop.permute.xlu1 %601 }
  0xc8   : > { %v3473_v38 = vpop.eup %3472  ;;  %3492 = vrcp.f32 %v520_v28 }
  0xc9   : > { %v3475_v41 = vpop.eup %3474  ;;  %v519_v42 = vadd.f32 1.0, %v3473_v38  ;;  %3494 = vrcp.f32 %v515_v31  ;;  %v896_v28 = vpop.permute.xlu0 %895 }
  0xca   : > { %v3477_v43 = vpop.eup %3476  ;;  %3496 = vrcp.f32 %v526_v35  ;;  %v571_v2 = vmul.f32 %v3475_v41, %v4269_v16 }
  0xcb   : > { %v3479_v45 = vpop.eup %3478  ;;  %3498 = vrcp.f32 %v519_v42  ;;  %v517_v48 = vadd.f32 1.0, %v3477_v43  ;;  %v901_v35 = vpop.permute.xlu1 %900 }
  0xcc   : > { %v3481_v49 = vpop.eup %3480  ;;  %3500 = vrcp.f32 %v529_v40  ;;  %v521_v50 = vadd.f32 1.0, %v3479_v45 }
  0xcd   : > { %v3483_v51 = vpop.eup %3482  ;;  %3502 = vrcp.f32 %v517_v48  ;;  %v607_v38 = vpop.permute.xlu0 %606 }
  0xce   : > { %v3485_v54 = vpop.eup %3484  ;;  %3504 = vrcp.f32 %v521_v50  ;;  %v573_v12 = vmul.f32 %v3483_v51, %v4277_v21 }
  0xcf   : > { %v3487_v55 = vpop.eup %3486  ;;  %3506 = vrcp.f32 %v528_v47  ;;  %v562_v1 = vmul.f32 %v3485_v54, %v4280_v23  ;;  %v570_v23 = vmul.f32 %v3471_v36, %v4266_v14 }
  0xd0   : > { %v3489_v56 = vpop.eup %3488 }
  0xd1   : > { %v3491_v58 = vpop.eup %3490  ;;  %v566_v62 = vmul.f32 %v3489_v56, %v4288_v29  ;;  %v564_v29 = vmul.f32 %v3487_v55, %v4284_v25  ;;  %v572_v25 = vmul.f32 %v3481_v49, %v4273_v19  ;;  %v579_v19 = vld [vmem:[%s5114_s2 + $0x8] sm:$0xff] }
  0xd2   : > { %v3493_v59 = vpop.eup %3492  ;;  %v575_v7 = vmul.f32 %v3491_v58, %v4292_v32 }
  0xd3   : > { %v3495_v61 = vpop.eup %3494  ;;  %v568_v6 = vmul.f32 %v3493_v59, %v4296_v34  ;;  %v3272_v9 = vpack.c.bf16 %v566_v62, %v562_v1 }
  0xd4   : > { %v3497_v63 = vpop.eup %3496  ;;  %v563_v4 = vmul.f32 %v3495_v61, %v4300_v37  ;;  %v3274_v15 = vpack.c.bf16 %v575_v7, %v571_v2 }
  0xd5   : > { %v3499_v0 = vpop.eup %3498  ;;  %v574_v34 = vmul.f32 %v3497_v63, %v4303_v39  ;;  %v3280_v32 = vpack.c.bf16 %v568_v6, %v564_v29  ;;  %v578_v39 = vld [vmem:[%s5114_s2] sm:$0xff] }
  0xd6   : > { %v3501_v3 = vpop.eup %3500  ;;  %v567_v5 = vmul.f32 %v3499_v0, %v4317_v52 }
  0xd7   : > { %v3503_v8 = vpop.eup %3502  ;;  %v577_v52 = vmul.f32 %v3501_v3, %v4308_v44  ;;  %v3276_v18 = vpack.c.bf16 %v574_v34, %v570_v23  ;;  %v4421_v3 = vpop.permute.xlu1 %611 }
  0xd8   : > { %v3505_v10 = vpop.eup %3504  ;;  %v3270_v11 = vpack.c.bf16 %v567_v5, %v563_v4  ;;  %v565_v13 = vmul.f32 %v3503_v8, %v4321_v57  ;;  %v581_v57 = vld [vmem:[%s5114_s2 + $0x18] sm:$0xff] }
  0xd9   : > { %v3507_v16 = vpop.eup %3506  ;;  %v569_v37 = vmul.f32 %v3505_v10, %v4325_v60  ;;  %v3282_v14 = vpack.c.bf16 %v577_v52, %v573_v12  ;;  %v582_v60 = vld [vmem:[%s5114_s2 + $0x20] sm:$0xff] }
  0xda   : > { %3271 = vmatprep.subr.bf16.mxu0 %v3270_v11  ;;  %v576_v21 = vmul.f32 %v3507_v16, %v4312_v46  ;;  %v580_v46 = vld [vmem:[%s5114_s2 + $0x10] sm:$0xff] }
  0xdb   : > { %v3278_v17 = vpack.c.bf16 %v569_v37, %v565_v13  ;;  %3273 = vmatpush1.bf16.msra.mxu0 %v3272_v9  ;;  %v906_v9 = vpop.permute.xlu0 %905 }
  0xdc   : > { %3275 = vmatprep.subr.bf16.mxu0 %v3274_v15  ;;  %v3284_v44 = vpack.c.bf16 %v576_v21, %v572_v25 }
  0xdd   : > { %3279 = vmatprep.subr.bf16.mxu1 %v3278_v17 }
  0xde   : > { %3281 = vmatpush1.bf16.msra.mxu1 %v3280_v32 }
  0xdf   : > { %3283 = vmatprep.subr.bf16.mxu1 %v3282_v14  ;;  %3277 = vmatpush1.bf16.msra.mxu0 %v3276_v18 }
  0xe2   : > { %3285 = vmatpush1.bf16.msra.mxu1 %v3284_v44  ;;  %3075 = vmatmul.mubr.msk.f32.vlgmr.msra.gmra.mrb[0].mxu0 %vm634_vm0, %v578_v39  ;;  %v911_v44 = vpop.permute.xlu1 %910 }
  0xe3   : > { %729 = vmatprep.mubr.f32.mxu0 %v5123_v53 }
  0xe5   : > { %3083 = vmatmul.mubr.msk.f32.vlgmr.msra.gmra.mrb[0].mxu1 %vm634_vm0, %v578_v39 }
  0xe6   : > { %842 = vmatprep.mubr.f32.mxu1 %v5123_v53  ;;  %3076 = vmatmul.mubr.msk.f32.gmra.mrb[2].mxu0 %vm634_vm0, %v579_v19 }
  0xe7   : > { %735 = vmatprep.mubr.f32.mxu0 %v5123_v53 }
  0xe9   : > { %3084 = vmatmul.mubr.msk.f32.gmra.mrb[2].mxu1 %vm634_vm0, %v579_v19 }
  0xea   : > { %848 = vmatprep.mubr.f32.mxu1 %v5123_v53  ;;  %3077 = vmatmul.mubr.msk.f32.gmra.mrb[4].mxu0 %vm634_vm0, %v580_v46 }
  0xeb   : > { %741 = vmatprep.mubr.f32.mxu0 %v5123_v53 }
  0xed   : > { %3085 = vmatmul.mubr.msk.f32.gmra.mrb[4].mxu1 %vm634_vm0, %v580_v46 }
  0xee   : > { %854 = vmatprep.mubr.f32.mxu1 %v5123_v53  ;;  %3078 = vmatmul.mubr.msk.f32.gmra.mrb[6].mxu0 %vm634_vm0, %v581_v57 }
  0xef   : > { %747 = vmatprep.mubr.f32.mxu0 %v5123_v53 }
  0xf1   : > { %3086 = vmatmul.mubr.msk.f32.gmra.mrb[6].mxu1 %vm634_vm0, %v581_v57 }
  0xf2   : > { %860 = vmatprep.mubr.f32.mxu1 %v5123_v53  ;;  %3079 = vmatmul.mubr.msk.f32.gmra.mrb[8].mxu0 %vm634_vm0, %v582_v60 }
  0xf3   : > { %753 = vmatprep.mubr.f32.mxu0 %v5123_v53 }
  0xf5   : > { %3087 = vmatmul.mubr.msk.f32.gmra.mrb[8].mxu1 %vm634_vm0, %v582_v60 }
  0xf6   : > { %866 = vmatprep.mubr.f32.mxu1 %v5123_v53  ;;  %3080 = vmatmul.mubr.msk.f32.gmra.mrb[10].mxu0 %vm634_vm0, %v583_v20 }
  0xf7   : > { %759 = vmatprep.mubr.f32.mxu0 %v5123_v53 }
  0xf9   : > { %3088 = vmatmul.mubr.msk.f32.gmra.mrb[10].mxu1 %vm634_vm0, %v583_v20 }
  0xfa   : > { %872 = vmatprep.mubr.f32.mxu1 %v5123_v53  ;;  %3081 = vmatmul.mubr.msk.f32.gmra.mrb[12].mxu0 %vm634_vm0, %v584_v22 }
  0xfb   : > { %765 = vmatprep.mubr.f32.mxu0 %v5123_v53 }
  0xfd   : > { %3089 = vmatmul.mubr.msk.f32.gmra.mrb[12].mxu1 %vm634_vm0, %v584_v22 }
  0xfe   : > { %878 = vmatprep.mubr.f32.mxu1 %v5123_v53  ;;  %3082 = vmatmul.mubr.msk.f32.gmra.mrb[14].mxu0 %vm634_vm0, %v585_v24 }
  0xff   : > { %1294 = vmatprep.mubr.f32.mxu0 %v5123_v53 }
 0x101   : > { %3090 = vmatmul.mubr.msk.f32.gmra.mrb[14].mxu1 %vm634_vm0, %v585_v24 }
 0x102   : > { %1383 = vmatprep.mubr.f32.mxu1 %v5123_v53 }
 0x1b5   : > { %v725_v30 = vpop.f32.mrb[0].mxu0 }
 0x1b6   : > { %v4401_v31 = vadd.f32 %v725_v30, %v597_v26  ;;  %v727_v33 = vpop.f32.mrb[1].mxu0 }
 0x1b7   : > { %v4403_v36 = vadd.f32 %v727_v33, %v597_v26  ;;  %v617_v33 = vpop.permute.xlu0 %616 }
 0x1b8   : > { %v933_v40 = vmul.f32 %v896_v28, %v4401_v31  ;;  %v838_v41 = vpop.f32.mrb[0].mxu1 }
 0x1b9   : > { %v4406_v42 = vadd.f32 %v838_v41, %v597_v26  ;;  %v934_v43 = vmul.f32 %v896_v28, %v4403_v36  ;;  %v840_v45 = vpop.f32.mrb[1].mxu1  ;;  %v731_v47 = vpop.f32.mrb[2].mxu0 }
 0x1ba   : > { %v3091_v48 = vmul.f32 -1.442695, %v933_v40  ;;  %v4409_v49 = vadd.f32 %v840_v45, %v597_v26  ;;  %v4411_v50 = vadd.f32 %v731_v47, %v602_v27  ;;  %v733_v51 = vpop.f32.mrb[3].mxu0 }
 0x1bb   : > { %v935_v54 = vmul.f32 %v896_v28, %v4406_v42  ;;  %v3092_v55 = vmul.f32 -1.442695, %v934_v43  ;;  %v4414_v56 = vadd.f32 %v733_v51, %v602_v27 }
 0x1bc   : > { %3508 = vpow2.f32 %v3091_v48  ;;  %v936_v58 = vmul.f32 %v896_v28, %v4409_v49  ;;  %v937_v59 = vmul.f32 %v901_v35, %v4411_v50  ;;  %v844_v61 = vpop.f32.mrb[2].mxu1 }
 0x1bd   : > { %v3093_v62 = vmul.f32 -1.442695, %v935_v54  ;;  %3510 = vpow2.f32 %v3092_v55  ;;  %v4418_v63 = vadd.f32 %v844_v61, %v602_v27  ;;  %v938_v0 = vmul.f32 %v901_v35, %v4414_v56  ;;  %v846_v1 = vpop.f32.mrb[3].mxu1  ;;  %v737_v2 = vpop.f32.mrb[4].mxu0 }
 0x1be   : > { %v3094_v4 = vmul.f32 -1.442695, %v936_v58  ;;  %v3095_v5 = vmul.f32 -1.442695, %v937_v59  ;;  %v4423_v6 = vadd.f32 %v846_v1, %v602_v27  ;;  %v4425_v7 = vadd.f32 %v737_v2, %v607_v38  ;;  %v739_v8 = vpop.f32.mrb[5].mxu0 }
 0x1bf   : > { %3512 = vpow2.f32 %v3093_v62  ;;  %v939_v10 = vmul.f32 %v901_v35, %v4418_v63  ;;  %v3096_v11 = vmul.f32 -1.442695, %v938_v0  ;;  %v4428_v29 = vadd.f32 %v739_v8, %v607_v38 }
 0x1c0   : > { %3514 = vpow2.f32 %v3094_v4  ;;  %v940_v12 = vmul.f32 %v901_v35, %v4423_v6  ;;  %v941_v23 = vmul.f32 %v906_v9, %v4425_v7  ;;  %v850_v16 = vpop.f32.mrb[4].mxu1 }
 0x1c1   : > { %3516 = vpow2.f32 %v3095_v5  ;;  %v3097_v13 = vmul.f32 -1.442695, %v939_v10  ;;  %v4432_v37 = vadd.f32 %v850_v16, %v607_v38  ;;  %v942_v52 = vmul.f32 %v906_v9, %v4428_v29  ;;  %v852_v34 = vpop.f32.mrb[5].mxu1  ;;  %v743_v32 = vpop.f32.mrb[6].mxu0 }
 0x1c2   : > { %3518 = vpow2.f32 %v3096_v11  ;;  %v3098_v15 = vmul.f32 -1.442695, %v940_v12  ;;  %v3099_v17 = vmul.f32 -1.442695, %v941_v23  ;;  %v4435_v25 = vadd.f32 %v852_v34, %v607_v38  ;;  %v745_v21 = vpop.f32.mrb[7].mxu0  ;;  %v916_v5 = vpop.permute.xlu0 %915 }
 0x1c3   : > { %3520 = vpow2.f32 %v3097_v13  ;;  %v943_v14 = vmul.f32 %v906_v9, %v4432_v37  ;;  %v3100_v18 = vmul.f32 -1.442695, %v942_v52  ;;  %v4439_v39 = vadd.f32 %v743_v32, %v4421_v3  ;;  %v622_v12 = vpop.permute.xlu1 %621 }
 0x1c4   : > { %3522 = vpow2.f32 %v3098_v15  ;;  %v944_v19 = vmul.f32 %v906_v9, %v4435_v25  ;;  %v856_v46 = vpop.f32.mrb[6].mxu1  ;;  %v4444_v27 = vadd.f32 %v745_v21, %v4421_v3 }
 0x1c5   : > { %3524 = vpow2.f32 %v3099_v17  ;;  %v3101_v57 = vmul.f32 -1.442695, %v943_v14  ;;  %v945_v60 = vmul.f32 %v911_v44, %v4439_v39  ;;  %v858_v20 = vpop.f32.mrb[7].mxu1  ;;  %v749_v22 = vpop.f32.mrb[8].mxu0  ;;  %v4447_v54 = vadd.f32 %v856_v46, %v4421_v3 }
 0x1c6   : > { %v3509_v24 = vpop.eup %3508  ;;  %3526 = vpow2.f32 %v3100_v18  ;;  %v3102_v26 = vmul.f32 -1.442695, %v944_v19  ;;  %v751_v28 = vpop.f32.mrb[9].mxu0  ;;  %v946_v55 = vmul.f32 %v911_v44, %v4444_v27  ;;  %v4451_v1 = vadd.f32 %v858_v20, %v4421_v3 }
 0x1c7   : > { %v3511_v30 = vpop.eup %3510  ;;  %v1061_v35 = vadd.f32 1.0, %v3509_v24  ;;  %3528 = vpow2.f32 %v3101_v57  ;;  %v3103_v38 = vmul.f32 -1.442695, %v945_v60  ;;  %v4453_v9 = vadd.f32 %v749_v22, %v617_v33 }
 0x1c8   : > { %v1062_v40 = vadd.f32 1.0, %v3511_v30  ;;  %3530 = vpow2.f32 %v3102_v26  ;;  %v862_v41 = vpop.f32.mrb[8].mxu1  ;;  %v947_v16 = vmul.f32 %v911_v44, %v4447_v54  ;;  %v3104_v13 = vmul.f32 -1.442695, %v946_v55 }
 0x1c9   : > { %v3513_v43 = vpop.eup %3512  ;;  %3532 = vrcp.f32 %v1061_v35  ;;  %v864_v45 = vpop.f32.mrb[9].mxu1  ;;  %v4456_v32 = vadd.f32 %v862_v41, %v617_v33  ;;  %v4458_v15 = vadd.f32 %v751_v28, %v617_v33  ;;  %v948_v18 = vmul.f32 %v911_v44, %v4451_v1 }
 0x1ca   : > { %v755_v47 = vpop.f32.mrb[10].mxu0  ;;  %v3515_v48 = vpop.eup %3514  ;;  %v1063_v51 = vadd.f32 1.0, %v3513_v43  ;;  %3534 = vrcp.f32 %v1062_v40  ;;  %v4463_v19 = vadd.f32 %v864_v45, %v617_v33  ;;  %v949_v20 = vmul.f32 %v916_v5, %v4453_v9 }
 0x1cb   : > { %v757_v58 = vpop.f32.mrb[11].mxu0  ;;  %v3517_v59 = vpop.eup %3516  ;;  %v1064_v61 = vadd.f32 1.0, %v3515_v48  ;;  %3536 = vpow2.f32 %v3103_v38  ;;  %v4466_v22 = vadd.f32 %v755_v47, %v622_v12  ;;  %v3105_v35 = vmul.f32 -1.442695, %v947_v16 }
 0x1cc   : > { %v3519_v62 = vpop.eup %3518  ;;  %3538 = vrcp.f32 %v1063_v51  ;;  %v1065_v0 = vadd.f32 1.0, %v3517_v59  ;;  %v868_v2 = vpop.f32.mrb[10].mxu1  ;;  %v951_v43 = vmul.f32 %v916_v5, %v4456_v32  ;;  %v950_v45 = vmul.f32 %v916_v5, %v4458_v15 }
 0x1cd   : > { %v3521_v4 = vpop.eup %3520  ;;  %3540 = vrcp.f32 %v1064_v61  ;;  %v1066_v8 = vadd.f32 1.0, %v3519_v62  ;;  %v870_v10 = vpop.f32.mrb[11].mxu1  ;;  %v4472_v38 = vadd.f32 %v868_v2, %v622_v12  ;;  %v952_v51 = vmul.f32 %v916_v5, %v4463_v19 }
 0x1ce   : > { %v3523_v11 = vpop.eup %3522  ;;  %3542 = vrcp.f32 %v1065_v0  ;;  %v1067_v23 = vadd.f32 1.0, %v3521_v4  ;;  %v761_v52 = vpop.f32.mrb[12].mxu0  ;;  %v4481_v55 = vadd.f32 %v757_v58, %v622_v12  ;;  %v4483_v59 = vadd.f32 %v870_v10, %v622_v12 }
 0x1cf   : > { %v3525_v34 = vpop.eup %3524  ;;  %3544 = vrcp.f32 %v1066_v8  ;;  %v1068_v3 = vadd.f32 1.0, %v3523_v11  ;;  %v4460_v17 = vpop.f32.mrb[13].mxu0  ;;  %v3106_v0 = vmul.f32 -1.442695, %v948_v18  ;;  %v3107_v2 = vmul.f32 -1.442695, %v949_v20 }
 0x1d0   : > { %v3527_v21 = vpop.eup %3526  ;;  %3546 = vrcp.f32 %v1067_v23  ;;  %v1069_v14 = vadd.f32 1.0, %v3525_v34  ;;  %v874_v46 = vpop.f32.mrb[12].mxu1  ;;  %v3109_v10 = vmul.f32 -1.442695, %v951_v43  ;;  %v3108_v12 = vmul.f32 -1.442695, %v950_v45 }
 0x1d1   : > { %v3529_v57 = vpop.eup %3528  ;;  %3548 = vrcp.f32 %v1068_v3  ;;  %v1070_v60 = vadd.f32 1.0, %v3527_v21  ;;  %v4468_v24 = vpop.f32.mrb[13].mxu1  ;;  %v3110_v3 = vmul.f32 -1.442695, %v952_v51 }
 0x1d2   : > { %v4470_v26 = vpop.f32.mrb[14].mxu0  ;;  %v3531_v28 = vpop.eup %3530  ;;  %3550 = vrcp.f32 %v1069_v14  ;;  %v1071_v30 = vadd.f32 1.0, %v3529_v57 }
 0x1d3   : > { %v4474_v44 = vpop.f32.mrb[15].mxu0  ;;  %v3533_v33 = vpop.eup %3532  ;;  %3552 = vrcp.f32 %v1070_v60  ;;  %v1072_v41 = vadd.f32 1.0, %v3531_v28 }
 0x1d4   : > { %v4476_v40 = vpop.permute.xlu0 %626  ;;  %v3535_v47 = vpop.eup %3534  ;;  %3554 = vrcp.f32 %v1071_v30  ;;  %v1157_v60 = vmul.f32 %v3533_v33, %v4401_v31 }
 0x1d5   : > { %v921_v48 = vpop.permute.xlu1 %920  ;;  %v4485_v61 = vpop.f32.mrb[14].mxu1  ;;  %3556 = vrcp.f32 %v1072_v41  ;;  %v4492_v58 = vadd.f32 %v761_v52, %v4476_v40  ;;  %v4501_v52 = vadd.f32 %v874_v46, %v4476_v40 }
 0x1d6   : > { %v3537_v62 = vpop.eup %3536  ;;  %v953_v4 = vmul.f32 %v921_v48, %v4466_v22  ;;  %v4488_v8 = vpop.f32.mrb[15].mxu1  ;;  %3558 = vpow2.f32 %v3105_v35  ;;  %v955_v16 = vmul.f32 %v921_v48, %v4472_v38  ;;  %v954_v21 = vmul.f32 %v921_v48, %v4481_v55 }
 0x1d7   : > { %v3539_v11 = vpop.eup %3538  ;;  %v1073_v23 = vadd.f32 1.0, %v3537_v62  ;;  %3560 = vpow2.f32 %v3104_v13  ;;  %v956_v14 = vmul.f32 %v921_v48, %v4483_v59 }
 0x1d8   : > { %v3541_v5 = vpop.eup %3540  ;;  %v4496_v57 = vpop.permute.xlu0 %925  ;;  %v3111_v28 = vmul.f32 -1.442695, %v953_v4  ;;  %v3113_v30 = vmul.f32 -1.442695, %v955_v16  ;;  %v1159_v43 = vmul.f32 %v3539_v11, %v4406_v42  ;;  %v1158_v11 = vmul.f32 %v3535_v47, %v4403_v36 }
 0x1d9   : > { %v3543_v34 = vpop.eup %3542  ;;  %3562 = vrcp.f32 %v1073_v23  ;;  %v957_v35 = vmul.f32 %v4496_v57, %v4492_v58  ;;  %v3114_v33 = vmul.f32 -1.442695, %v956_v14  ;;  %v1160_v16 = vmul.f32 %v3541_v5, %v4409_v49  ;;  %v632_v47 = vpop.permute.xlu1 %631 }
 0x1da   : > { %v3545_v18 = vpop.eup %3544  ;;  %v1161_v20 = vmul.f32 %v3543_v34, %v4411_v50  ;;  %3564 = vpow2.f32 %v3106_v0  ;;  %v3112_v50 = vmul.f32 -1.442695, %v954_v21  ;;  %v959_v0 = vmul.f32 %v4496_v57, %v4501_v52 }
 0x1db   : > { %v3547_v13 = vpop.eup %3546  ;;  %3566 = vpow2.f32 %v3107_v2  ;;  %v1162_v62 = vmul.f32 %v3545_v18, %v4414_v56 }
 0x1dc   : > { %v3549_v41 = vpop.eup %3548  ;;  %v3288_v45 = vpack.c.bf16 %v1161_v20, %v1157_v60  ;;  %v1163_v48 = vmul.f32 %v3547_v13, %v4418_v63  ;;  %3568 = vpow2.f32 %v3109_v10  ;;  %v3115_v63 = vmul.f32 -1.442695, %v957_v35 }
 0x1dd   : > { %v3551_v31 = vpop.eup %3550  ;;  %3570 = vpow2.f32 %v3108_v12  ;;  %v1164_v42 = vmul.f32 %v3549_v41, %v4423_v6  ;;  %v3117_v12 = vmul.f32 -1.442695, %v959_v0  ;;  %v3286_v34 = vpack.c.bf16 %v1162_v62, %v1158_v11 }
 0x1de   : > { %v4507_v46 = vpop.eup %3552  ;;  %v3304_v51 = vpack.c.bf16 %v1163_v48, %v1159_v43  ;;  %3572 = vpow2.f32 %v3110_v3  ;;  %v4520_v18 = vmul.f32 %v3551_v31, %v4425_v7  ;;  %v4527_v60 = vadd.f32 %v4460_v17, %v4476_v40 }
 0x1df   : > { %v4512_v2 = vpop.eup %3554  ;;  %3574 = vpow2.f32 %v3111_v28  ;;  %v3302_v6 = vpack.c.bf16 %v1164_v42, %v1160_v16  ;;  %3287 = vmatprep.subr.bf16.mxu0 %v3286_v34  ;;  %v4536_v41 = vadd.f32 %v4470_v26, %v632_v47  ;;  %v4541_v31 = vadd.f32 %v4485_v61, %v632_v47 }
 0x1e0   : > { %v4515_v4 = vpop.eup %3556  ;;  %3576 = vpow2.f32 %v3113_v30  ;;  %3289 = vmatpush1.bf16.msra.mxu0 %v3288_v45  ;;  %v958_v48 = vmul.f32 %v4496_v57, %v4527_v60  ;;  %v4549_v0 = vadd.f32 %v4488_v8, %v632_v47  ;;  %v1167_v8 = vmul.f32 %v4512_v2, %v4432_v37 }
 0x1e1   : > { %v3559_v23 = vpop.eup %3558  ;;  %3578 = vpow2.f32 %v3112_v50  ;;  %3303 = vmatprep.subr.bf16.mxu1 %v3302_v6  ;;  %v1166_v6 = vmul.f32 %v4507_v46, %v4428_v29 }
 0x1e2   : > { %v3561_v56 = vpop.eup %3560  ;;  %v1075_v10 = vadd.f32 1.0, %v3559_v23  ;;  %3580 = vpow2.f32 %v3114_v33  ;;  %3305 = vmatpush1.bf16.msra.mxu1 %v3304_v51  ;;  %v4546_v33 = vadd.f32 %v4474_v44, %v632_v47  ;;  %v931_v51 = vpop.permute.xlu1 %930  ;;  %v3116_v16 = vmul.f32 -1.442695, %v958_v48 }
 0x1e3   : > { %v3563_v3 = vpop.eup %3562  ;;  %v1074_v21 = vadd.f32 1.0, %v3561_v56  ;;  %3582 = vpow2.f32 %v3115_v63  ;;  %v961_v63 = vmul.f32 %v931_v51, %v4536_v41 }
 0x1e4   : > { %v3565_v14 = vpop.eup %3564  ;;  %v4523_v36 = vmul.f32 %v3563_v3, %v4439_v39  ;;  %3584 = vrcp.f32 %v1075_v10  ;;  %v4533_v39 = vadd.f32 %v4468_v24, %v4476_v40  ;;  %v962_v10 = vmul.f32 %v931_v51, %v4546_v33 }
 0x1e5   : > { %v3567_v49 = vpop.eup %3566  ;;  %3586 = vrcp.f32 %v1074_v21  ;;  %v1076_v5 = vadd.f32 1.0, %v3565_v14  ;;  %v964_v3 = vmul.f32 %v931_v51, %v4549_v0 }
 0x1e6   : > { %v3569_v20 = vpop.eup %3568  ;;  %v3292_v7 = vpack.c.bf16 %v4523_v36, %v4520_v18  ;;  %v1077_v13 = vadd.f32 1.0, %v3567_v49  ;;  %3588 = vpow2.f32 %v3117_v12  ;;  %v960_v50 = vmul.f32 %v4496_v57, %v4533_v39 }
 0x1e7   : > { %v3571_v28 = vpop.eup %3570  ;;  %3590 = vrcp.f32 %v1076_v5  ;;  %v1079_v30 = vadd.f32 1.0, %v3569_v20  ;;  %v963_v57 = vmul.f32 %v931_v51, %v4541_v31  ;;  %v3119_v49 = vmul.f32 -1.442695, %v961_v63 }
 0x1e8   : > { %v3573_v35 = vpop.eup %3572  ;;  %3592 = vrcp.f32 %v1077_v13  ;;  %v1078_v17 = vadd.f32 1.0, %v3571_v28  ;;  %v3118_v56 = vmul.f32 -1.442695, %v960_v50  ;;  %v1168_v5 = vmul.f32 %v4515_v4, %v4435_v25 }
 0x1e9   : > { %v3575_v43 = vpop.eup %3574  ;;  %3594 = vrcp.f32 %v1079_v30  ;;  %v1080_v45 = vadd.f32 1.0, %v3573_v35  ;;  %v3121_v13 = vmul.f32 -1.442695, %v963_v57  ;;  %v3120_v2 = vmul.f32 -1.442695, %v962_v10 }
 0x1ea   : > { %v3577_v24 = vpop.eup %3576  ;;  %3596 = vrcp.f32 %v1078_v17  ;;  %v1081_v40 = vadd.f32 1.0, %v3575_v43  ;;  %v3122_v35 = vmul.f32 -1.442695, %v964_v3 }
 0x1eb   : > { %v3579_v26 = vpop.eup %3578  ;;  %3598 = vrcp.f32 %v1080_v45  ;;  %v1083_v62 = vadd.f32 1.0, %v3577_v24 }
 0x1ec   : > { %v3581_v42 = vpop.eup %3580  ;;  %3600 = vrcp.f32 %v1081_v40  ;;  %v1082_v61 = vadd.f32 1.0, %v3579_v26 }
 0x1ed   : > { %v3583_v11 = vpop.eup %3582  ;;  %3602 = vrcp.f32 %v1083_v62  ;;  %v1084_v23 = vadd.f32 1.0, %v3581_v42 }
 0x1ee   : > { %v3585_v44 = vpop.eup %3584  ;;  %3604 = vrcp.f32 %v1082_v61 }
 0x1ef   : > { %v3587_v12 = vpop.eup %3586  ;;  %v1171_v34 = vmul.f32 %v3585_v44, %v4447_v54  ;;  %3606 = vrcp.f32 %v1084_v23 }
 0x1f0   : > { %v3589_v21 = vpop.eup %3588  ;;  %v1170_v14 = vmul.f32 %v3587_v12, %v4444_v27  ;;  %3608 = vpow2.f32 %v3116_v16 }
 0x1f1   : > { %v3591_v47 = vpop.eup %3590  ;;  %v3308_v20 = vpack.c.bf16 %v1171_v34, %v1167_v8  ;;  %3610 = vpow2.f32 %v3118_v56 }
 0x1f2   : > { %v3593_v37 = vpop.eup %3592  ;;  %v1172_v54 = vmul.f32 %v3591_v47, %v4451_v1  ;;  %v3290_v28 = vpack.c.bf16 %v1170_v14, %v1166_v6  ;;  %3612 = vpow2.f32 %v3119_v49 }
 0x1f3   : > { %v3595_v30 = vpop.eup %3594  ;;  %3614 = vpow2.f32 %v3121_v13  ;;  %v1173_v1 = vmul.f32 %v3593_v37, %v4453_v9 }
 0x1f4   : > { %v3597_v17 = vpop.eup %3596  ;;  %3291 = vmatprep.subr.bf16.mxu0 %v3290_v28  ;;  %v3306_v29 = vpack.c.bf16 %v1172_v54, %v1168_v5  ;;  %3616 = vpow2.f32 %v3120_v2  ;;  %v1175_v45 = vmul.f32 %v3595_v30, %v4456_v32 }
 0x1f5   : > { %v3599_v27 = vpop.eup %3598  ;;  %3293 = vmatpush1.bf16.msra.mxu0 %v3292_v7  ;;  %3618 = vpow2.f32 %v3122_v35  ;;  %v1174_v40 = vmul.f32 %v3597_v17, %v4458_v15  ;;  %v1085_v7 = vadd.f32 1.0, %v3583_v11 }
 0x1f6   : > { %v3601_v25 = vpop.eup %3600  ;;  %3307 = vmatprep.subr.bf16.mxu1 %v3306_v29  ;;  %v1176_v50 = vmul.f32 %v3599_v27, %v4463_v19 }
 0x1f7   : > { %v3603_v46 = vpop.eup %3602  ;;  %v1177_v4 = vmul.f32 %v3601_v25, %v4466_v22  ;;  %3309 = vmatpush1.bf16.msra.mxu1 %v3308_v20  ;;  %v1087_v22 = vadd.f32 1.0, %v3589_v21  ;;  %3620 = vrcp.f32 %v1085_v7  ;;  %v1205_v25 = vpop.permute.xlu1 %1204 }
 0x1f8   : > { %v3605_v43 = vpop.eup %3604  ;;  %v1179_v48 = vmul.f32 %v3603_v46, %v4472_v38  ;;  %v3860_v46 = vld [vmem:[%s4263_s18] sm:$0xff] }
 0x1f9   : > { %v3607_v24 = vpop.eup %3606  ;;  %v3296_v18 = vpack.c.bf16 %v1177_v4, %v1173_v1  ;;  %v1178_v36 = vmul.f32 %v3605_v43, %v4481_v55  ;;  %3622 = vrcp.f32 %v1087_v22  ;;  %v3861_v4 = vld [vmem:[%s4263_s18 + $0x10] sm:$0xff] }
 0x1fa   : > { %v3312_v26 = vpack.c.bf16 %v1179_v48, %v1175_v45  ;;  %v1180_v9 = vmul.f32 %v3607_v24, %v4483_v59  ;;  %v3609_v51 = vpop.eup %3608  ;;  %v3862_v48 = vld [vmem:[%s4263_s18 + $0x8] sm:$0xff] }
 0x1fb   : > { %v3294_v62 = vpack.c.bf16 %v1178_v36, %v1174_v40  ;;  %v3611_v42 = vpop.eup %3610  ;;  %v1086_v61 = vadd.f32 1.0, %v3609_v51  ;;  %v3864_v51 = vld [vmem:[%s4263_s18 + $0x20] sm:$0xff] }
 0x1fc   : > { %v3310_v32 = vpack.c.bf16 %v1180_v9, %v1176_v50  ;;  %v1088_v38 = vadd.f32 1.0, %v3611_v42  ;;  %v3613_v63 = vpop.eup %3612  ;;  %v3863_v9 = vld [vmem:[%s4263_s18 + $0x18] sm:$0xff] }
 0x1fd   : > { %3295 = vmatprep.subr.bf16.mxu0 %v3294_v62  ;;  %v3615_v15 = vpop.eup %3614  ;;  %3624 = vrcp.f32 %v1086_v61  ;;  %v1089_v55 = vadd.f32 1.0, %v3613_v63  ;;  %v3865_v63 = vld [vmem:[%s4263_s18 + $0x30] sm:$0xff] }
 0x1fe   : > { %3311 = vmatprep.subr.bf16.mxu1 %v3310_v32  ;;  %3297 = vmatpush1.bf16.msra.mxu0 %v3296_v18  ;;  %v3617_v19 = vpop.eup %3616  ;;  %3626 = vrcp.f32 %v1088_v38  ;;  %v1091_v59 = vadd.f32 1.0, %v3615_v15 }
 0x1ff   : > { %3313 = vmatpush1.bf16.msra.mxu1 %v3312_v26  ;;  %v3619_v11 = vpop.eup %3618  ;;  %3628 = vrcp.f32 %v1089_v55  ;;  %v1090_v23 = vadd.f32 1.0, %v3617_v19  ;;  %v3866_v55 = vld [vmem:[%s4263_s18 + $0x28] sm:$0xff] }
 0x200   : > { %3630 = vrcp.f32 %v1091_v59  ;;  %v1092_v16 = vadd.f32 1.0, %v3619_v11 }
 0x201   : > { %3632 = vrcp.f32 %v1090_v23  ;;  %v3621_v57 = vpop.eup %3620 }
 0x202   : > { %3634 = vrcp.f32 %v1092_v16  ;;  %v1181_v34 = vmul.f32 %v3621_v57, %v4492_v58  ;;  %v3867_v16 = vld [vmem:[%s4263_s18 + $0x38] sm:$0xff] }
 0x203   : > { %v3623_v44 = vpop.eup %3622 }
 0x204   : > { %v1183_v6 = vmul.f32 %v3623_v44, %v4501_v52  ;;  %v1189_v52 = vld [vmem:[%s5117_s5] sm:$0xff] }
 0x207   : > { %v3625_v56 = vpop.eup %3624 }
 0x208   : > { %v3627_v10 = vpop.eup %3626  ;;  %v1182_v47 = vmul.f32 %v3625_v56, %v4527_v60  ;;  %v1190_v60 = vld [vmem:[%s5117_s5 + $0x8] sm:$0xff] }
 0x209   : > { %v3629_v12 = vpop.eup %3628  ;;  %v1184_v13 = vmul.f32 %v3627_v10, %v4533_v39  ;;  %v1191_v39 = vld [vmem:[%s5117_s5 + $0x10] sm:$0xff] }
 0x20a   : > { %v3631_v8 = vpop.eup %3630  ;;  %v1185_v3 = vmul.f32 %v3629_v12, %v4536_v41  ;;  %v1192_v41 = vld [vmem:[%s5117_s5 + $0x18] sm:$0xff] }
 0x20b   : > { %v3633_v21 = vpop.eup %3632  ;;  %v1187_v14 = vmul.f32 %v3631_v8, %v4541_v31  ;;  %v1200_v31 = vpop.permute.xlu0 %1199 }
 0x20c   : > { %v3635_v49 = vpop.eup %3634  ;;  %v3300_v5 = vpack.c.bf16 %v1185_v3, %v1181_v34  ;;  %v1186_v20 = vmul.f32 %v3633_v21, %v4546_v33 }
 0x20d   : > { %v3316_v37 = vpack.c.bf16 %v1187_v14, %v1183_v6  ;;  %v1188_v54 = vmul.f32 %v3635_v49, %v4549_v0 }
 0x20e   : > { %v3298_v2 = vpack.c.bf16 %v1186_v20, %v1182_v47 }
 0x20f   : > { %v3314_v58 = vpack.c.bf16 %v1188_v54, %v1184_v13  ;;  %v1210_v61 = vpop.permute.xlu0 %1209  ;;  %v3868_v54 = vld [vmem:[%s4263_s18 + $0x40] sm:$0xff] }
 0x210   : > { %3299 = vmatprep.subr.bf16.mxu0 %v3298_v2 }
 0x211   : > { %3315 = vmatprep.subr.bf16.mxu1 %v3314_v58  ;;  %3301 = vmatpush1.bf16.msra.mxu0 %v3300_v5  ;;  %v1215_v5 = vpop.permute.xlu1 %1214  ;;  %v3869_v58 = vld [vmem:[%s4263_s18 + $0x50] sm:$0xff] }
 0x212   : > { %3317 = vmatpush1.bf16.msra.mxu1 %v3316_v37 }
 0x214   : > { %3123 = vmatmul.mubr.msk.f32.vlgmr.msra.gmra.mrb[16].mxu0 %vm1217_vm1, %v1189_v52 }
 0x215   : > { %3127 = vmatmul.mubr.msk.f32.vlgmr.msra.gmra.mrb[16].mxu1 %vm1217_vm1, %v1189_v52  ;;  %1300 = vmatprep.mubr.f32.mxu0 %v5123_v53 }
 0x216   : > { %1389 = vmatprep.mubr.f32.mxu1 %v5123_v53 }
 0x218   : > { %3124 = vmatmul.mubr.msk.f32.gmra.mrb[18].mxu0 %vm1217_vm1, %v1190_v60 }
 0x219   : > { %3128 = vmatmul.mubr.msk.f32.gmra.mrb[18].mxu1 %vm1217_vm1, %v1190_v60  ;;  %1306 = vmatprep.mubr.f32.mxu0 %v5123_v53 }
 0x21a   : > { %1395 = vmatprep.mubr.f32.mxu1 %v5123_v53 }
 0x21c   : > { %3125 = vmatmul.mubr.msk.f32.gmra.mrb[20].mxu0 %vm1217_vm1, %v1191_v39 }
 0x21d   : > { %3129 = vmatmul.mubr.msk.f32.gmra.mrb[20].mxu1 %vm1217_vm1, %v1191_v39  ;;  %1312 = vmatprep.mubr.f32.mxu0 %v5123_v53 }
 0x21e   : > { %1401 = vmatprep.mubr.f32.mxu1 %v5123_v53 }
 0x220   : > { %3126 = vmatmul.mubr.msk.f32.gmra.mrb[22].mxu0 %vm1217_vm1, %v1192_v41 }
 0x221   : > { %3130 = vmatmul.mubr.msk.f32.gmra.mrb[22].mxu1 %vm1217_vm1, %v1192_v41  ;;  %1544 = vmatprep.mubr.f32.mxu0 %v5123_v53 }
 0x222   : > { %1633 = vmatprep.mubr.f32.mxu1 %v5123_v53 }
 0x2e7   : > { %v1296_v33 = vpop.f32.mrb[16].mxu0 }
 0x2e8   : > { %v1297_v0 = vadd.f32 %v1296_v33, %v1200_v31  ;;  %v1385_v28 = vpop.f32.mrb[16].mxu1  ;;  %v1298_v30 = vpop.f32.mrb[17].mxu0  ;;  %v3870_v33 = vld [vmem:[%s4263_s18 + $0x48] sm:$0xff] }
 0x2e9   : > { %v1386_v35 = vadd.f32 %v1385_v28, %v1200_v31  ;;  %v1299_v17 = vadd.f32 %v1298_v30, %v1200_v31  ;;  %v1387_v29 = vpop.f32.mrb[17].mxu1 }
 0x2ea   : > { %v1388_v27 = vadd.f32 %v1387_v29, %v1200_v31  ;;  %v1408_v1 = vadd.f32 %v3860_v46, %v1297_v0 }
 0x2eb   : > { %v1410_v43 = vadd.f32 %v3861_v4, %v1386_v35  ;;  %v1302_v45 = vpop.f32.mrb[18].mxu0  ;;  %v1409_v24 = vadd.f32 %v3862_v48, %v1299_v17  ;;  %v3871_v17 = vld [vmem:[%s4263_s18 + $0x58] sm:$0xff] }
 0x2ec   : > { %v1303_v40 = vadd.f32 %v1302_v45, %v1205_v25  ;;  %v1391_v18 = vpop.f32.mrb[18].mxu1  ;;  %v1304_v36 = vpop.f32.mrb[19].mxu0  ;;  %v1411_v22 = vadd.f32 %v3863_v9, %v1388_v27  ;;  %v1424_v32 = vmul.f32 0.70710677, %v1408_v1  ;;  %v3872_v27 = vld [vmem:[%s4263_s18 + $0x60] sm:$0xff]  ;;  %v3873_v1 = vld [vmem:[%s4263_s18 + $0x70] sm:$0xff] }
 0x2ed   : > { %v1392_v7 = vadd.f32 %v1391_v18, %v1205_v25  ;;  %v1305_v50 = vadd.f32 %v1304_v36, %v1205_v25  ;;  %v1393_v26 = vpop.f32.mrb[19].mxu1  ;;  %v1426_v38 = vmul.f32 0.70710677, %v1410_v43  ;;  %v1425_v11 = vmul.f32 0.70710677, %v1409_v24  ;;  %v3874_v43 = vld [vmem:[%s4263_s18 + $0x68] sm:$0xff] }
 0x2ee   : > { %v1412_v62 = vadd.f32 %v3864_v51, %v1303_v40  ;;  %v1394_v42 = vadd.f32 %v1393_v26, %v1205_v25  ;;  %v1427_v6 = vmul.f32 0.70710677, %v1411_v22  ;;  %v3875_v18 = vld [vmem:[%s4263_s18 + $0x78] sm:$0xff]  ;;  %s3880_s18 = sshll.u32 %s3942_s21, 4  ;;  %s3881_s18 = int_to_ptr.vmem [resolvable:$false] %s3880_s18 }
 0x2ef   : > { %v1414_v15 = vadd.f32 %v3865_v63, %v1392_v7  ;;  %v1413_v19 = vadd.f32 %v3866_v55, %v1305_v50  ;;  %v1308_v59 = vpop.f32.mrb[20].mxu0  ;;  %v1442_v63 = vld [vmem:[%s5119_s7 + $0x10] sm:$0xff]  ;;  %v1451_v55 = vpop.permute.xlu0 %1450  ;;  %s3882_s25 = scalar_lea.vmem %s3881_s18, 4096  ;;  %p3883_p2 = scmp.lt.s32.totalorder %s5063_s27, %s3881_s18 }
 0x2f0   : > { %v1428_v23 = vmul.f32 0.70710677, %v1412_v62  ;;  %v1415_v57 = vadd.f32 %v3867_v16, %v1394_v42  ;;  %v1309_v44 = vadd.f32 %v1308_v59, %v1210_v61  ;;  %v1397_v56 = vpop.f32.mrb[20].mxu1  ;;  %v1310_v10 = vpop.f32.mrb[21].mxu0  ;;  %p3884_p3 = scmp.lt.s32.totalorder %s3882_s25, %s3876_s20 }
 0x2f1   : > { %v1430_v12 = vmul.f32 0.70710677, %v1414_v15  ;;  %v1429_v8 = vmul.f32 0.70710677, %v1413_v19  ;;  %v1398_v34 = vadd.f32 %v1397_v56, %v1210_v61  ;;  %v1311_v3 = vadd.f32 %v1310_v10, %v1210_v61  ;;  %v1399_v21 = vpop.f32.mrb[21].mxu1  ;;  %v1443_v15 = vld [vmem:[%s5119_s7 + $0x18] sm:$0xff]  ;;  %v1456_v19 = vpop.permute.xlu1 %1455 }
 0x2f2   : > { %v3320_v14 = vpack.c.bf16 %v1428_v23, %v1424_v32  ;;  %v1431_v49 = vmul.f32 0.70710677, %v1415_v57  ;;  %v1400_v47 = vadd.f32 %v1399_v21, %v1210_v61  ;;  %v1416_v2 = vadd.f32 %v3868_v54, %v1309_v44  ;;  %v1440_v32 = vld [vmem:[%s5119_s7] sm:$0xff]  ;;  %p3885_p4 = por %p3884_p3, %p3883_p2 }
 0x2f3   : > { %v3328_v20 = vpack.c.bf16 %v1430_v12, %v1426_v38  ;;  %v1314_v13 = vpop.f32.mrb[22].mxu0  ;;  %v3318_v37 = vpack.c.bf16 %v1429_v8, %v1425_v11  ;;  %v1418_v52 = vadd.f32 %v3869_v58, %v1398_v34  ;;  %v1417_v0 = vadd.f32 %v3870_v33, %v1311_v3  ;;  %v1441_v38 = vld [vmem:[%s5119_s7 + $0x8] sm:$0xff]  ;;  %v1666_v59 = vpop.permute.xlu0 %1665 }
 0x2f4   : > { %v1315_v60 = vadd.f32 %v1314_v13, %v1215_v5  ;;  %v1403_v39 = vpop.f32.mrb[22].mxu1  ;;  %v1316_v41 = vpop.f32.mrb[23].mxu0  ;;  %v3326_v31 = vpack.c.bf16 %v1431_v49, %v1427_v6  ;;  %v1419_v29 = vadd.f32 %v3871_v17, %v1400_v47  ;;  %v1432_v48 = vmul.f32 0.70710677, %v1416_v2  ;;  %p3886_p5 = pnand %p3885_p4, %p3879_p1 }
 0x2f5   : > { %v1404_v28 = vadd.f32 %v1403_v39, %v1215_v5  ;;  %v1317_v30 = vadd.f32 %v1316_v41, %v1215_v5  ;;  %v1405_v35 = vpop.f32.mrb[23].mxu1  ;;  %3319 = vmatprep.subr.bf16.mxu0 %v3318_v37  ;;  %v1434_v24 = vmul.f32 0.70710677, %v1418_v52  ;;  %v1433_v7 = vmul.f32 0.70710677, %v1417_v0  ;;  %v1671_v44 = vpop.permute.xlu1 %1670 }
 0x2f6   : > { %v1420_v25 = vadd.f32 %v3872_v27, %v1315_v60  ;;  %v1406_v46 = vadd.f32 %v1405_v35, %v1215_v5  ;;  %3327 = vmatprep.subr.bf16.mxu1 %v3326_v31  ;;  %3321 = vmatpush1.bf16.msra.mxu0 %v3320_v14  ;;  %v1435_v9 = vmul.f32 0.70710677, %v1419_v29 }
 0x2f7   : > { %v1422_v4 = vadd.f32 %v3873_v1, %v1404_v28  ;;  %v1421_v45 = vadd.f32 %v3874_v43, %v1317_v30  ;;  %3329 = vmatpush1.bf16.msra.mxu1 %v3328_v20  ;;  %v1461_v3 = vpop.permute.xlu0 %1460 }
 0x2f8   : > { %v1436_v40 = vmul.f32 0.70710677, %v1420_v25  ;;  %v1423_v36 = vadd.f32 %v3875_v18, %v1406_v46 }
 0x2f9   : > { %v1438_v50 = vmul.f32 0.70710677, %v1422_v4  ;;  %v1437_v26 = vmul.f32 0.70710677, %v1421_v45  ;;  %v1466_v31 = vpop.permute.xlu1 %1465 }
 0x2fa   : > { %v3324_v22 = vpack.c.bf16 %v1436_v40, %v1432_v48  ;;  %v1439_v51 = vmul.f32 0.70710677, %v1423_v36 }
 0x2fb   : > { %v3332_v62 = vpack.c.bf16 %v1438_v50, %v1434_v24  ;;  %v3322_v42 = vpack.c.bf16 %v1437_v26, %v1433_v7  ;;  %v1676_v25 = vpop.permute.xlu0 %1675 }
 0x2fc   : > { %v3330_v61 = vpack.c.bf16 %v1439_v51, %v1435_v9 }
 0x2fd   : > { %3323 = vmatprep.subr.bf16.mxu0 %v3322_v42 }
 0x2fe   : > { %3331 = vmatprep.subr.bf16.mxu1 %v3330_v61  ;;  %3325 = vmatpush1.bf16.msra.mxu0 %v3324_v22  ;;  %v1681_v22 = vpop.permute.xlu1 %1680 }
 0x2ff   : > { %3333 = vmatpush1.bf16.msra.mxu1 %v3332_v62 }
 0x301   : > { %3131 = vmatmul.mubr.msk.f32.vlgmr.msra.gmra.mrb[24].mxu0 %vm634_vm0, %v1440_v32 }
 0x302   : > { %3135 = vmatmul.mubr.msk.f32.vlgmr.msra.gmra.mrb[24].mxu1 %vm634_vm0, %v1440_v32  ;;  %1550 = vmatprep.mubr.f32.mxu0 %v5123_v53 }
 0x303   : > { %1639 = vmatprep.mubr.f32.mxu1 %v5123_v53 }
 0x305   : > { %3132 = vmatmul.mubr.msk.f32.gmra.mrb[26].mxu0 %vm634_vm0, %v1441_v38 }
 0x306   : > { %3136 = vmatmul.mubr.msk.f32.gmra.mrb[26].mxu1 %vm634_vm0, %v1441_v38  ;;  %1556 = vmatprep.mubr.f32.mxu0 %v5123_v53 }
 0x307   : > { %1645 = vmatprep.mubr.f32.mxu1 %v5123_v53 }
 0x309   : > { %3133 = vmatmul.mubr.msk.f32.gmra.mrb[28].mxu0 %vm634_vm0, %v1442_v63 }
 0x30a   : > { %3137 = vmatmul.mubr.msk.f32.gmra.mrb[28].mxu1 %vm634_vm0, %v1442_v63  ;;  %1562 = vmatprep.mubr.f32.mxu0 %v5123_v53 }
 0x30b   : > { %1651 = vmatprep.mubr.f32.mxu1 %v5123_v53 }
 0x30d   : > { %3134 = vmatmul.mubr.msk.f32.gmra.mrb[30].mxu0 %vm634_vm0, %v1443_v15 }
 0x30e   : > { %3138 = vmatmul.mubr.msk.f32.gmra.mrb[30].mxu1 %vm634_vm0, %v1443_v15  ;;  %1957 = vmatprep.mubr.f32.mxu0 %v5123_v53 }
 0x30f   : > { %2070 = vmatprep.mubr.f32.mxu1 %v5123_v53 }
 0x3d4   : > { %v1546_v11 = vpop.f32.mrb[24].mxu0 }
 0x3d5   : > { %v4655_v23 = vadd.f32 %v1546_v11, %v1451_v55  ;;  %v1635_v16 = vpop.f32.mrb[24].mxu1  ;;  %v1548_v57 = vpop.f32.mrb[25].mxu0 }
 0x3d6   : > { %v4657_v56 = vadd.f32 %v1635_v16, %v1451_v55  ;;  %v4659_v10 = vadd.f32 %v1548_v57, %v1451_v55  ;;  %v1637_v12 = vpop.f32.mrb[25].mxu1 }
 0x3d7   : > { %v1683_v8 = vmul.f32 %v1666_v59, %v4655_v23  ;;  %v4662_v34 = vadd.f32 %v1637_v12, %v1451_v55 }
 0x3d8   : > { %v1685_v21 = vmul.f32 %v1666_v59, %v4657_v56  ;;  %v1684_v6 = vmul.f32 %v1666_v59, %v4659_v10  ;;  %v1552_v14 = vpop.f32.mrb[26].mxu0 }
 0x3d9   : > { %v3143_v49 = vmul.f32 -1.442695, %v1683_v8  ;;  %v1686_v47 = vmul.f32 %v1666_v59, %v4662_v34  ;;  %v4667_v5 = vadd.f32 %v1552_v14, %v1456_v19  ;;  %v1641_v20 = vpop.f32.mrb[26].mxu1  ;;  %v1554_v13 = vpop.f32.mrb[27].mxu0 }
 0x3da   : > { %v3145_v37 = vmul.f32 -1.442695, %v1685_v21  ;;  %v3144_v54 = vmul.f32 -1.442695, %v1684_v6  ;;  %v4669_v2 = vadd.f32 %v1641_v20, %v1456_v19  ;;  %v4671_v58 = vadd.f32 %v1554_v13, %v1456_v19  ;;  %v1643_v52 = vpop.f32.mrb[27].mxu1 }
 0x3db   : > { %3636 = vpow2.f32 %v3143_v49  ;;  %v3146_v60 = vmul.f32 -1.442695, %v1686_v47  ;;  %v1687_v39 = vmul.f32 %v1671_v44, %v4667_v5  ;;  %v4674_v41 = vadd.f32 %v1643_v52, %v1456_v19 }
 0x3dc   : > { %5138 = vst [vmem:[#allocation6_spill] sm:$0xff] %v4669_v2  ;;  %5139 = vst [vmem:[#allocation7_spill] sm:$0xff] %v4671_v58  ;;  %3638 = vpow2.f32 %v3145_v37  ;;  %v1689_v33 = vmul.f32 %v1671_v44, %v4669_v2  ;;  %v1688_v0 = vmul.f32 %v1671_v44, %v4671_v58  ;;  %v1558_v28 = vpop.f32.mrb[28].mxu0 }
 0x3dd   : > { %5140 = vst [vmem:[#allocation8_spill] sm:$0xff] %v4674_v41  ;;  %3640 = vpow2.f32 %v3144_v54  ;;  %v3147_v30 = vmul.f32 -1.442695, %v1687_v39  ;;  %v1690_v35 = vmul.f32 %v1671_v44, %v4674_v41  ;;  %v4679_v17 = vadd.f32 %v1558_v28, %v1461_v3  ;;  %v1647_v29 = vpop.f32.mrb[28].mxu1  ;;  %v1560_v27 = vpop.f32.mrb[29].mxu0 }
 0x3de   : > { %3642 = vpow2.f32 %v3146_v60  ;;  %v3149_v46 = vmul.f32 -1.442695, %v1689_v33  ;;  %v3148_v1 = vmul.f32 -1.442695, %v1688_v0  ;;  %v4681_v4 = vadd.f32 %v1647_v29, %v1461_v3  ;;  %v1649_v43 = vpop.f32.mrb[29].mxu1 }
 0x3df   : > { %5141 = vst [vmem:[#allocation9_spill] sm:$0xff] %v4679_v17  ;;  %3644 = vpow2.f32 %v3147_v30  ;;  %v3150_v45 = vmul.f32 -1.442695, %v1690_v35  ;;  %v1691_v48 = vmul.f32 %v1676_v25, %v4679_v17  ;;  %v4684_v24 = vadd.f32 %v1560_v27, %v1461_v3 }
 0x3e0   : > { %5142 = vst [vmem:[#allocation10_spill] sm:$0xff] %v4681_v4  ;;  %3646 = vpow2.f32 %v3149_v46  ;;  %v1693_v40 = vmul.f32 %v1676_v25, %v4681_v4  ;;  %v1564_v18 = vpop.f32.mrb[30].mxu0  ;;  %v4691_v32 = vadd.f32 %v1649_v43, %v1461_v3 }
 0x3e1   : > { %5143 = vst [vmem:[#allocation11_spill] sm:$0xff] %v4684_v24  ;;  %3648 = vpow2.f32 %v3148_v1  ;;  %v3151_v36 = vmul.f32 -1.442695, %v1691_v48  ;;  %v1692_v7 = vmul.f32 %v1676_v25, %v4684_v24  ;;  %v4688_v50 = vadd.f32 %v1564_v18, %v1466_v31  ;;  %v1653_v26 = vpop.f32.mrb[30].mxu1  ;;  %v1566_v9 = vpop.f32.mrb[31].mxu0 }
 0x3e2   : > { %3650 = vpow2.f32 %v3150_v45  ;;  %v3153_v51 = vmul.f32 -1.442695, %v1693_v40  ;;  %v1655_v62 = vpop.f32.mrb[31].mxu1  ;;  %5145 = vst [vmem:[#allocation13_spill] sm:$0xff] %v4691_v32  ;;  %v1694_v57 = vmul.f32 %v1676_v25, %v4691_v32  ;;  %v4694_v8 = vadd.f32 %v1653_v26, %v1466_v31 }
 0x3e3   : > { %5144 = vst [vmem:[#allocation12_spill] sm:$0xff] %v4688_v50  ;;  %v3152_v42 = vmul.f32 -1.442695, %v1692_v7  ;;  %v1695_v61 = vmul.f32 %v1681_v22, %v4688_v50  ;;  %3652 = vpow2.f32 %v3151_v36  ;;  %v4696_v6 = vadd.f32 %v1566_v9, %v1466_v31 }
 0x3e4   : > { %3654 = vpow2.f32 %v3153_v51  ;;  %5146 = vst [vmem:[#allocation14_spill] sm:$0xff] %v4694_v8  ;;  %v4698_v47 = vadd.f32 %v1655_v62, %v1466_v31  ;;  %v3154_v37 = vmul.f32 -1.442695, %v1694_v57  ;;  %v1697_v52 = vmul.f32 %v1681_v22, %v4694_v8 }
 0x3e5   : > { %v3637_v38 = vpop.eup %3636  ;;  %v3155_v63 = vmul.f32 -1.442695, %v1695_v61  ;;  %3656 = vpow2.f32 %v3152_v42  ;;  %5147 = vst [vmem:[#allocation15_spill] sm:$0xff] %v4696_v6  ;;  %v1696_v39 = vmul.f32 %v1681_v22, %v4696_v6 }
 0x3e6   : > { %v3639_v15 = vpop.eup %3638  ;;  %v1747_v55 = vadd.f32 1.0, %v3637_v38  ;;  %5148 = vst [vmem:[#allocation16_spill] sm:$0xff] %v4698_v47  ;;  %v1698_v0 = vmul.f32 %v1681_v22, %v4698_v47  ;;  %v3157_v30 = vmul.f32 -1.442695, %v1697_v52 }
 0x3e7   : > { %v3641_v19 = vpop.eup %3640  ;;  %v1749_v59 = vadd.f32 1.0, %v3639_v15  ;;  %3658 = vpow2.f32 %v3155_v63  ;;  %v3156_v29 = vmul.f32 -1.442695, %v1696_v39 }
 0x3e8   : > { %v3643_v11 = vpop.eup %3642  ;;  %3660 = vrcp.f32 %v1747_v55  ;;  %v1748_v16 = vadd.f32 1.0, %v3641_v19  ;;  %v3158_v25 = vmul.f32 -1.442695, %v1698_v0 }
 0x3e9   : > { %v3645_v44 = vpop.eup %3644  ;;  %3662 = vrcp.f32 %v1749_v59  ;;  %v1750_v12 = vadd.f32 1.0, %v3643_v11 }
 0x3ea   : > { %v3647_v3 = vpop.eup %3646  ;;  %3664 = vrcp.f32 %v1748_v16  ;;  %v1751_v21 = vadd.f32 1.0, %v3645_v44 }
 0x3eb   : > { %v3649_v14 = vpop.eup %3648  ;;  %3666 = vrcp.f32 %v1750_v12  ;;  %v1753_v49 = vadd.f32 1.0, %v3647_v3 }
 0x3ec   : > { %v3651_v20 = vpop.eup %3650  ;;  %3668 = vrcp.f32 %v1751_v21  ;;  %v1752_v13 = vadd.f32 1.0, %v3649_v14 }
 0x3ed   : > { %3670 = vrcp.f32 %v1753_v49  ;;  %v1754_v54 = vadd.f32 1.0, %v3651_v20  ;;  %v3653_v60 = vpop.eup %3652 }
 0x3ee   : > { %3672 = vrcp.f32 %v1752_v13  ;;  %v3655_v33 = vpop.eup %3654  ;;  %v1755_v9 = vadd.f32 1.0, %v3653_v60 }
 0x3ef   : > { %3674 = vrcp.f32 %v1754_v54  ;;  %v3657_v28 = vpop.eup %3656  ;;  %v1757_v61 = vadd.f32 1.0, %v3655_v33 }
 0x3f0   : > { %3676 = vpow2.f32 %v3154_v37  ;;  %v1756_v63 = vadd.f32 1.0, %v3657_v28 }
 0x3f1   : > { %v3659_v31 = vpop.eup %3658  ;;  %3678 = vpow2.f32 %v3157_v30 }
 0x3f2   : > { %v3661_v35 = vpop.eup %3660  ;;  %3680 = vpow2.f32 %v3156_v29  ;;  %v1759_v19 = vadd.f32 1.0, %v3659_v31 }
 0x3f3   : > { %v3663_v27 = vpop.eup %3662  ;;  %3682 = vpow2.f32 %v3158_v25  ;;  %v1795_v51 = vmul.f32 %v3661_v35, %v4655_v23 }
 0x3f4   : > { %v3665_v46 = vpop.eup %3664  ;;  %v1797_v38 = vmul.f32 %v3663_v27, %v4657_v56  ;;  %3684 = vrcp.f32 %v1755_v9  ;;  %v3166_v9 = vld [vmem:[%s5114_s2 + $0x78] sm:$0xff] }
 0x3f5   : > { %v3667_v1 = vpop.eup %3666  ;;  %v1796_v36 = vmul.f32 %v3665_v46, %v4659_v10  ;;  %3686 = vrcp.f32 %v1757_v61 }
 0x3f6   : > { %v3669_v43 = vpop.eup %3668  ;;  %v1798_v62 = vmul.f32 %v3667_v1, %v4662_v34  ;;  %3688 = vrcp.f32 %v1756_v63 }
 0x3f7   : > { %v3671_v45 = vpop.eup %3670  ;;  %v1799_v40 = vmul.f32 %v3669_v43, %v4667_v5  ;;  %3690 = vrcp.f32 %v1759_v19 }
 0x3f8   : > { %v3673_v48 = vpop.eup %3672  ;;  %v1801_v7 = vmul.f32 %v3671_v45, %v4669_v2  ;;  %v3159_v45 = vld [vmem:[%s5114_s2 + $0x40] sm:$0xff] }
 0x3f9   : > { %v3675_v18 = vpop.eup %3674  ;;  %v1800_v26 = vmul.f32 %v3673_v48, %v4671_v58  ;;  %v3336_v55 = vpack.c.bf16 %v1799_v40, %v1795_v51  ;;  %v3160_v48 = vld [vmem:[%s5114_s2 + $0x48] sm:$0xff]  ;;  %v3161_v40 = vld [vmem:[%s5114_s2 + $0x50] sm:$0xff]  ;;  %v1837_v51 = vpop.permute.xlu1 %1836 }
 0x3fa   : > { %v3677_v22 = vpop.eup %3676  ;;  %v1802_v42 = vmul.f32 %v3675_v18, %v4674_v41  ;;  %v3344_v11 = vpack.c.bf16 %v1801_v7, %v1797_v38  ;;  %v3162_v18 = vld [vmem:[%s5114_s2 + $0x58] sm:$0xff]  ;;  %v3164_v7 = vld [vmem:[%s5114_s2 + $0x68] sm:$0xff] }
 0x3fb   : > { %v3334_v15 = vpack.c.bf16 %v1800_v26, %v1796_v36  ;;  %v1758_v16 = vadd.f32 1.0, %v3677_v22  ;;  %v3679_v57 = vpop.eup %3678  ;;  %v3163_v36 = vld [vmem:[%s5114_s2 + $0x60] sm:$0xff]  ;;  %v3165_v26 = vld [vmem:[%s5114_s2 + $0x70] sm:$0xff]  ;;  %v1832_v22 = vpop.permute.xlu0 %1831 }
 0x3fc   : > { %v3342_v59 = vpack.c.bf16 %v1802_v42, %v1798_v62  ;;  %v3681_v44 = vpop.eup %3680  ;;  %v1761_v12 = vadd.f32 1.0, %v3679_v57 }
 0x3fd   : > { %3335 = vmatprep.subr.bf16.mxu0 %v3334_v15  ;;  %v3683_v3 = vpop.eup %3682  ;;  %3692 = vrcp.f32 %v1758_v16  ;;  %v1760_v21 = vadd.f32 1.0, %v3681_v44  ;;  %v2136_v15 = vpop.permute.xlu1 %2135 }
 0x3fe   : > { %3343 = vmatprep.subr.bf16.mxu1 %v3342_v59  ;;  %3337 = vmatpush1.bf16.msra.mxu0 %v3336_v55  ;;  %3694 = vrcp.f32 %v1761_v12  ;;  %v1762_v14 = vadd.f32 1.0, %v3683_v3  ;;  %v3685_v49 = vpop.eup %3684 }
 0x3ff   : > { %3345 = vmatpush1.bf16.msra.mxu1 %v3344_v11  ;;  %3696 = vrcp.f32 %v1760_v21  ;;  %v3687_v20 = vpop.eup %3686  ;;  %v1803_v30 = vmul.f32 %v3685_v49, %v4679_v17  ;;  %v2131_v62 = vpop.permute.xlu0 %2130 }
 0x400   : > { %3698 = vrcp.f32 %v1762_v14  ;;  %v3689_v13 = vpop.eup %3688  ;;  %v1805_v27 = vmul.f32 %v3687_v20, %v4681_v4 }
 0x401   : > { %v3691_v37 = vpop.eup %3690  ;;  %v1804_v0 = vmul.f32 %v3689_v13, %v4684_v24 }
 0x402   : > { %v1807_v39 = vmul.f32 %v3691_v37, %v4688_v50 }
 0x403   : > { %v1842_v57 = vpop.permute.xlu0 %1841 }
 0x404   : > { %v3340_v46 = vpack.c.bf16 %v1807_v39, %v1803_v30 }
 0x407   : > { %v3693_v54 = vpop.eup %3692 }
 0x408   : > { %v3695_v52 = vpop.eup %3694  ;;  %v1806_v35 = vmul.f32 %v3693_v54, %v4691_v32 }
 0x409   : > { %v3697_v60 = vpop.eup %3696  ;;  %v1809_v28 = vmul.f32 %v3695_v52, %v4694_v8 }
 0x40a   : > { %v3699_v33 = vpop.eup %3698  ;;  %v1808_v31 = vmul.f32 %v3697_v60, %v4696_v6 }
 0x40b   : > { %v1810_v29 = vmul.f32 %v3699_v33, %v4698_v47  ;;  %v3348_v43 = vpack.c.bf16 %v1809_v28, %v1805_v27 }
 0x40c   : > { %v3338_v25 = vpack.c.bf16 %v1808_v31, %v1804_v0  ;;  %v4796_v31 = vpop.permute.xlu1 %1846 }
 0x40d   : > { %v3346_v1 = vpack.c.bf16 %v1810_v29, %v1806_v35 }
 0x40e   : > { %3339 = vmatprep.subr.bf16.mxu0 %v3338_v25 }
 0x40f   : > { %3347 = vmatprep.subr.bf16.mxu1 %v3346_v1  ;;  %3341 = vmatpush1.bf16.msra.mxu0 %v3340_v46 }
 0x410   : > { %3349 = vmatpush1.bf16.msra.mxu1 %v3348_v43 }
 0x412   : > { %3175 = vmatmul.mubr.msk.f32.vlgmr.msra.gmra.mrb[32].mxu0 %vm634_vm0, %v3159_v45 }
 0x413   : > { %3183 = vmatmul.mubr.msk.f32.vlgmr.msra.gmra.mrb[32].mxu1 %vm634_vm0, %v3159_v45  ;;  %1963 = vmatprep.mubr.f32.mxu0 %v5123_v53  ;;  %v2141_v45 = vpop.permute.xlu0 %2140 }
 0x414   : > { %2076 = vmatprep.mubr.f32.mxu1 %v5123_v53 }
 0x416   : > { %3176 = vmatmul.mubr.msk.f32.gmra.mrb[34].mxu0 %vm634_vm0, %v3160_v48 }
 0x417   : > { %3184 = vmatmul.mubr.msk.f32.gmra.mrb[34].mxu1 %vm634_vm0, %v3160_v48  ;;  %1969 = vmatprep.mubr.f32.mxu0 %v5123_v53 }
 0x418   : > { %2082 = vmatprep.mubr.f32.mxu1 %v5123_v53 }
 0x41a   : > { %3177 = vmatmul.mubr.msk.f32.gmra.mrb[36].mxu0 %vm634_vm0, %v3161_v40 }
 0x41b   : > { %3185 = vmatmul.mubr.msk.f32.gmra.mrb[36].mxu1 %vm634_vm0, %v3161_v40  ;;  %1975 = vmatprep.mubr.f32.mxu0 %v5123_v53 }
 0x41c   : > { %2088 = vmatprep.mubr.f32.mxu1 %v5123_v53 }
 0x41e   : > { %3178 = vmatmul.mubr.msk.f32.gmra.mrb[38].mxu0 %vm634_vm0, %v3162_v18 }
 0x41f   : > { %3186 = vmatmul.mubr.msk.f32.gmra.mrb[38].mxu1 %vm634_vm0, %v3162_v18  ;;  %1981 = vmatprep.mubr.f32.mxu0 %v5123_v53 }
 0x420   : > { %2094 = vmatprep.mubr.f32.mxu1 %v5123_v53 }
 0x422   : > { %3179 = vmatmul.mubr.msk.f32.gmra.mrb[40].mxu0 %vm634_vm0, %v3163_v36 }
 0x423   : > { %3187 = vmatmul.mubr.msk.f32.gmra.mrb[40].mxu1 %vm634_vm0, %v3163_v36  ;;  %1987 = vmatprep.mubr.f32.mxu0 %v5123_v53 }
 0x424   : > { %2100 = vmatprep.mubr.f32.mxu1 %v5123_v53 }
 0x426   : > { %3180 = vmatmul.mubr.msk.f32.gmra.mrb[42].mxu0 %vm634_vm0, %v3164_v7 }
 0x427   : > { %3188 = vmatmul.mubr.msk.f32.gmra.mrb[42].mxu1 %vm634_vm0, %v3164_v7  ;;  %1993 = vmatprep.mubr.f32.mxu0 %v5123_v53 }
 0x428   : > { %2106 = vmatprep.mubr.f32.mxu1 %v5123_v53 }
 0x42a   : > { %3181 = vmatmul.mubr.msk.f32.gmra.mrb[44].mxu0 %vm634_vm0, %v3165_v26 }
 0x42b   : > { %3189 = vmatmul.mubr.msk.f32.gmra.mrb[44].mxu1 %vm634_vm0, %v3165_v26  ;;  %1999 = vmatprep.mubr.f32.mxu0 %v5123_v53 }
 0x42c   : > { %2112 = vmatprep.mubr.f32.mxu1 %v5123_v53 }
 0x42e   : > { %3182 = vmatmul.mubr.msk.f32.gmra.mrb[46].mxu0 %vm634_vm0, %v3166_v9 }
 0x42f   : > { %3190 = vmatmul.mubr.msk.f32.gmra.mrb[46].mxu1 %vm634_vm0, %v3166_v9  ;;  %2530 = vmatprep.mubr.f32.mxu0 %v5123_v53 }
 0x430   : > { %2619 = vmatprep.mubr.f32.mxu1 %v5123_v53 }
 0x4e5   : > { %v1959_v42 = vpop.f32.mrb[32].mxu0 }
 0x4e6   : > { %v4775_v61 = vadd.f32 %v1959_v42, %v1832_v22  ;;  %v2072_v38 = vpop.f32.mrb[32].mxu1  ;;  %v1961_v63 = vpop.f32.mrb[33].mxu0 }
 0x4e7   : > { %v4777_v55 = vadd.f32 %v2072_v38, %v1832_v22  ;;  %v4779_v19 = vadd.f32 %v1961_v63, %v1832_v22  ;;  %v2074_v59 = vpop.f32.mrb[33].mxu1 }
 0x4e8   : > { %v2168_v11 = vmul.f32 %v2131_v62, %v4775_v61  ;;  %v4782_v16 = vadd.f32 %v2074_v59, %v1832_v22 }
 0x4e9   : > { %v2170_v44 = vmul.f32 %v2131_v62, %v4777_v55  ;;  %v2169_v12 = vmul.f32 %v2131_v62, %v4779_v19  ;;  %v1965_v3 = vpop.f32.mrb[34].mxu0 }
 0x4ea   : > { %v3199_v21 = vmul.f32 -1.442695, %v2168_v11  ;;  %v2171_v14 = vmul.f32 %v2131_v62, %v4782_v16  ;;  %v4787_v49 = vadd.f32 %v1965_v3, %v1837_v51  ;;  %v2078_v20 = vpop.f32.mrb[34].mxu1  ;;  %v1967_v13 = vpop.f32.mrb[35].mxu0 }
 0x4eb   : > { %v3201_v37 = vmul.f32 -1.442695, %v2170_v44  ;;  %v3200_v54 = vmul.f32 -1.442695, %v2169_v12  ;;  %v4789_v52 = vadd.f32 %v2078_v20, %v1837_v51  ;;  %v4791_v60 = vadd.f32 %v1967_v13, %v1837_v51  ;;  %v2080_v39 = vpop.f32.mrb[35].mxu1  ;;  %v4815_v11 = vpop.permute.xlu1 %2145 }
 0x4ec   : > { %3700 = vpow2.f32 %v3199_v21  ;;  %v3202_v33 = vmul.f32 -1.442695, %v2171_v14  ;;  %v2172_v0 = vmul.f32 %v2136_v15, %v4787_v49  ;;  %v4794_v28 = vadd.f32 %v2080_v39, %v1837_v51  ;;  %v1852_v14 = vpop.permute.xlu0 %1851 }
 0x4ed   : > { %3702 = vpow2.f32 %v3201_v37  ;;  %v2174_v30 = vmul.f32 %v2136_v15, %v4789_v52  ;;  %v2173_v35 = vmul.f32 %v2136_v15, %v4791_v60  ;;  %v1971_v29 = vpop.f32.mrb[36].mxu0 }
 0x4ee   : > { %3704 = vpow2.f32 %v3200_v54  ;;  %v3203_v27 = vmul.f32 -1.442695, %v2172_v0  ;;  %v2175_v25 = vmul.f32 %v2136_v15, %v4794_v28  ;;  %v4801_v46 = vadd.f32 %v1971_v29, %v1842_v57  ;;  %v2084_v1 = vpop.f32.mrb[36].mxu1  ;;  %v1973_v43 = vpop.f32.mrb[37].mxu0 }
 0x4ef   : > { %3706 = vpow2.f32 %v3202_v33  ;;  %v3205_v48 = vmul.f32 -1.442695, %v2174_v30  ;;  %v3204_v40 = vmul.f32 -1.442695, %v2173_v35  ;;  %v4803_v18 = vadd.f32 %v2084_v1, %v1842_v57  ;;  %v2086_v36 = vpop.f32.mrb[37].mxu1 }
 0x4f0   : > { %3708 = vpow2.f32 %v3203_v27  ;;  %v3206_v7 = vmul.f32 -1.442695, %v2175_v25  ;;  %v2176_v26 = vmul.f32 %v2141_v45, %v4801_v46  ;;  %v4806_v9 = vadd.f32 %v1973_v43, %v1842_v57 }
 0x4f1   : > { %3710 = vpow2.f32 %v3205_v48  ;;  %v2178_v22 = vmul.f32 %v2141_v45, %v4803_v18  ;;  %v4809_v51 = vadd.f32 %v2086_v36, %v1842_v57  ;;  %v1977_v62 = vpop.f32.mrb[38].mxu0 }
 0x4f2   : > { %3712 = vpow2.f32 %v3204_v40  ;;  %v3207_v42 = vmul.f32 -1.442695, %v2176_v26  ;;  %v2177_v38 = vmul.f32 %v2141_v45, %v4806_v9  ;;  %v4813_v63 = vadd.f32 %v1977_v62, %v4796_v31  ;;  %v2090_v15 = vpop.f32.mrb[38].mxu1  ;;  %v1979_v59 = vpop.f32.mrb[39].mxu0 }
 0x4f3   : > { %3714 = vpow2.f32 %v3206_v7  ;;  %v3209_v44 = vmul.f32 -1.442695, %v2178_v22  ;;  %v2179_v12 = vmul.f32 %v2141_v45, %v4809_v51  ;;  %v2092_v3 = vpop.f32.mrb[39].mxu1  ;;  %v4821_v39 = vadd.f32 %v2090_v15, %v4796_v31  ;;  %v4826_v45 = vpop.permute.xlu1 %1856 }
 0x4f4   : > { %3716 = vpow2.f32 %v3207_v42  ;;  %v3208_v57 = vmul.f32 -1.442695, %v2177_v38  ;;  %v2180_v21 = vmul.f32 %v4815_v11, %v4813_v63  ;;  %v4824_v1 = vadd.f32 %v1979_v59, %v4796_v31  ;;  %v2151_v38 = vpop.permute.xlu0 %2150 }
 0x4f5   : > { %3718 = vpow2.f32 %v3209_v44  ;;  %v3210_v20 = vmul.f32 -1.442695, %v2179_v12  ;;  %v1983_v13 = vpop.f32.mrb[40].mxu0  ;;  %v2182_v26 = vmul.f32 %v4815_v11, %v4821_v39  ;;  %v4831_v59 = vadd.f32 %v2092_v3, %v4796_v31 }
 0x4f6   : > { %v3701_v37 = vpop.eup %3700  ;;  %3720 = vpow2.f32 %v3208_v57  ;;  %v3211_v54 = vmul.f32 -1.442695, %v2180_v21  ;;  %v2096_v33 = vpop.f32.mrb[40].mxu1  ;;  %v2181_v21 = vmul.f32 %v4815_v11, %v4824_v1 }
 0x4f7   : > { %v1985_v0 = vpop.f32.mrb[41].mxu0  ;;  %v3703_v30 = vpop.eup %3702  ;;  %v2296_v35 = vadd.f32 1.0, %v3701_v37  ;;  %3722 = vpow2.f32 %v3210_v20  ;;  %v4835_v20 = vadd.f32 %v1983_v13, %v1852_v14  ;;  %v3213_v3 = vmul.f32 -1.442695, %v2182_v26 }
 0x4f8   : > { %v2098_v29 = vpop.f32.mrb[41].mxu1  ;;  %v3705_v27 = vpop.eup %3704  ;;  %v2298_v25 = vadd.f32 1.0, %v3703_v30  ;;  %3724 = vpow2.f32 %v3211_v54  ;;  %v4837_v30 = vadd.f32 %v2096_v33, %v1852_v14 }
 0x4f9   : > { %v3707_v43 = vpop.eup %3706  ;;  %3726 = vrcp.f32 %v2296_v35  ;;  %v2297_v48 = vadd.f32 1.0, %v3705_v27  ;;  %v1989_v40 = vpop.f32.mrb[42].mxu0  ;;  %v4839_v35 = vadd.f32 %v1985_v0, %v1852_v14 }
 0x4fa   : > { %v3709_v36 = vpop.eup %3708  ;;  %3728 = vrcp.f32 %v2298_v25  ;;  %v2299_v7 = vadd.f32 1.0, %v3707_v43  ;;  %v2102_v22 = vpop.f32.mrb[42].mxu1  ;;  %v4841_v43 = vadd.f32 %v2098_v29, %v1852_v14  ;;  %v4848_v33 = vadd.f32 %v1989_v40, %v4826_v45 }
 0x4fb   : > { %v1991_v62 = vpop.f32.mrb[43].mxu0  ;;  %v3711_v42 = vpop.eup %3710  ;;  %3730 = vrcp.f32 %v2297_v48  ;;  %v2300_v15 = vadd.f32 1.0, %v3709_v36  ;;  %v3212_v14 = vmul.f32 -1.442695, %v2181_v21  ;;  %v2184_v29 = vmul.f32 %v2151_v38, %v4835_v20 }
 0x4fc   : > { %v2104_v44 = vpop.f32.mrb[43].mxu1  ;;  %v3713_v12 = vpop.eup %3712  ;;  %3732 = vrcp.f32 %v2299_v7  ;;  %v2302_v57 = vadd.f32 1.0, %v3711_v42  ;;  %v2183_v42 = vmul.f32 %v4815_v11, %v4831_v59  ;;  %v2185_v11 = vmul.f32 %v2151_v38, %v4839_v35 }
 0x4fd   : > { %v3715_v37 = vpop.eup %3714  ;;  %3734 = vrcp.f32 %v2300_v15  ;;  %v2301_v54 = vadd.f32 1.0, %v3713_v12  ;;  %v1995_v27 = vpop.f32.mrb[44].mxu0  ;;  %v4861_v21 = vadd.f32 %v2102_v22, %v4826_v45  ;;  %v4869_v50 = vadd.f32 %v1991_v62, %v4826_v45 }
 0x4fe   : > { %v3717_v25 = vpop.eup %3716  ;;  %3736 = vrcp.f32 %v2302_v57  ;;  %v2303_v31 = vadd.f32 1.0, %v3715_v37  ;;  %v2108_v48 = vpop.f32.mrb[44].mxu1  ;;  %v4874_v22 = vadd.f32 %v2104_v44, %v4826_v45  ;;  %v3215_v24 = vmul.f32 -1.442695, %v2184_v29 }
 0x4ff   : > { %v4843_v36 = vpop.f32.mrb[45].mxu0  ;;  %v3719_v7 = vpop.eup %3718  ;;  %3738 = vrcp.f32 %v2301_v54  ;;  %v2304_v13 = vadd.f32 1.0, %v3717_v25  ;;  %v2186_v25 = vmul.f32 %v2151_v38, %v4837_v30  ;;  %v3216_v17 = vmul.f32 -1.442695, %v2185_v11 }
 0x500   : > { %v4850_v0 = vpop.f32.mrb[45].mxu1  ;;  %v3721_v15 = vpop.eup %3720  ;;  %3740 = vrcp.f32 %v2303_v31  ;;  %v2306_v26 = vadd.f32 1.0, %v3719_v7  ;;  %v2187_v31 = vmul.f32 %v2151_v38, %v4841_v43  ;;  %v3214_v38 = vmul.f32 -1.442695, %v2183_v42 }
 0x501   : > { %v2156_v12 = vpop.permute.xlu1 %2155  ;;  %v3723_v57 = vpop.eup %3722  ;;  %3742 = vrcp.f32 %v2304_v13  ;;  %v2305_v54 = vadd.f32 1.0, %v3721_v15  ;;  %v3217_v4 = vmul.f32 -1.442695, %v2186_v25 }
 0x502   : > { %v4853_v37 = vpop.permute.xlu0 %1861  ;;  %v4857_v40 = vpop.f32.mrb[46].mxu0  ;;  %3744 = vrcp.f32 %v2306_v26  ;;  %v2307_v47 = vadd.f32 1.0, %v3723_v57  ;;  %v2188_v8 = vmul.f32 %v2156_v12, %v4848_v33  ;;  %v2190_v62 = vmul.f32 %v2156_v12, %v4861_v21 }
 0x503   : > { %v3725_v53 = vpop.eup %3724  ;;  %v4863_v7 = vpop.f32.mrb[46].mxu1  ;;  %3746 = vrcp.f32 %v2305_v54  ;;  %v4877_v54 = vadd.f32 %v1995_v27, %v4853_v37  ;;  %v4881_v41 = vadd.f32 %v2108_v48, %v4853_v37  ;;  %v3218_v42 = vmul.f32 -1.442695, %v2187_v31 }
 0x504   : > { %v4865_v6 = vpop.f32.mrb[47].mxu0  ;;  %v3727_v13 = vpop.eup %3726  ;;  %v2308_v15 = vadd.f32 1.0, %v3725_v53  ;;  %3748 = vrcp.f32 %v2307_v47  ;;  %v3219_v45 = vmul.f32 -1.442695, %v2188_v8  ;;  %v2189_v44 = vmul.f32 %v2156_v12, %v4869_v50 }
 0x505   : > { %v4871_v32 = vpop.f32.mrb[47].mxu1  ;;  %v3729_v26 = vpop.eup %3728  ;;  %v2392_v27 = vmul.f32 %v3727_v13, %v4775_v61  ;;  %v3221_v2 = vmul.f32 -1.442695, %v2190_v62 }
 0x506   : > { %v3731_v57 = vpop.eup %3730  ;;  %3750 = vrcp.f32 %v2308_v15  ;;  %v4884_v29 = vpop.permute.xlu0 %2160  ;;  %v2394_v48 = vmul.f32 %v3729_v26, %v4777_v55 }
 0x507   : > { %v3733_v53 = vpop.eup %3732  ;;  %3752 = vpow2.f32 %v3213_v3  ;;  %v2191_v3 = vmul.f32 %v2156_v12, %v4874_v22  ;;  %v2192_v8 = vmul.f32 %v4884_v29, %v4877_v54  ;;  %v2194_v61 = vmul.f32 %v4884_v29, %v4881_v41 }
 0x508   : > { %v3735_v47 = vpop.eup %3734  ;;  %3754 = vpow2.f32 %v3212_v14  ;;  %v3220_v12 = vmul.f32 -1.442695, %v2189_v44  ;;  %v2395_v44 = vmul.f32 %v3733_v53, %v4782_v16  ;;  %v1867_v53 = vpop.permute.xlu1 %1866 }
 0x509   : > { %v3737_v15 = vpop.eup %3736  ;;  %v2396_v25 = vmul.f32 %v3735_v47, %v4787_v49  ;;  %3756 = vpow2.f32 %v3214_v38  ;;  %v3223_v26 = vmul.f32 -1.442695, %v2192_v8 }
 0x50a   : > { %v3739_v11 = vpop.eup %3738  ;;  %v2398_v58 = vmul.f32 %v3737_v15, %v4789_v52  ;;  %3758 = vpow2.f32 %v3215_v24  ;;  %v3222_v24 = vmul.f32 -1.442695, %v2191_v3 }
 0x50b   : > { %v3741_v14 = vpop.eup %3740  ;;  %v3352_v31 = vpack.c.bf16 %v2396_v25, %v2392_v27  ;;  %3760 = vpow2.f32 %v3217_v4  ;;  %v2397_v55 = vmul.f32 %v3739_v11, %v4791_v60  ;;  %v2393_v4 = vmul.f32 %v3731_v57, %v4779_v19 }
 0x50c   : > { %v3743_v49 = vpop.eup %3742  ;;  %v3368_v13 = vpack.c.bf16 %v2398_v58, %v2394_v48  ;;  %3762 = vpow2.f32 %v3216_v17  ;;  %v2399_v62 = vmul.f32 %v3741_v14, %v4794_v28  ;;  %v3225_v58 = vmul.f32 -1.442695, %v2194_v61 }
 0x50d   : > { %v4895_v38 = vpop.eup %3744  ;;  %3764 = vpow2.f32 %v3218_v42  ;;  %v4906_v60 = vmul.f32 %v3743_v49, %v4801_v46  ;;  %v4915_v11 = vadd.f32 %v4843_v36, %v4853_v37  ;;  %v4919_v14 = vadd.f32 %v4850_v0, %v4853_v37 }
 0x50e   : > { %v4898_v52 = vpop.eup %3746  ;;  %3766 = vpow2.f32 %v3219_v45  ;;  %v3350_v45 = vpack.c.bf16 %v2397_v55, %v2393_v4  ;;  %v3366_v16 = vpack.c.bf16 %v2399_v62, %v2395_v44  ;;  %v4925_v36 = vadd.f32 %v4863_v7, %v1867_v53  ;;  %v2166_v4 = vpop.permute.xlu1 %2165 }
 0x50f   : > { %v4900_v47 = vpop.eup %3748  ;;  %3768 = vpow2.f32 %v3221_v2  ;;  %v2193_v0 = vmul.f32 %v4884_v29, %v4915_v11  ;;  %v4930_v37 = vadd.f32 %v4865_v6, %v1867_v53  ;;  %v2195_v62 = vmul.f32 %v4884_v29, %v4919_v14 }
 0x510   : > { %v3751_v17 = vpop.eup %3750  ;;  %3770 = vpow2.f32 %v3220_v12  ;;  %3351 = vmatprep.subr.bf16.mxu0 %v3350_v45  ;;  %3367 = vmatprep.subr.bf16.mxu1 %v3366_v16  ;;  %v2198_v6 = vmul.f32 %v2166_v4, %v4925_v36 }
 0x511   : > { %v3753_v15 = vpop.eup %3752  ;;  %v4909_v42 = vmul.f32 %v3751_v17, %v4813_v63  ;;  %3772 = vpow2.f32 %v3222_v24  ;;  %3353 = vmatpush1.bf16.msra.mxu0 %v3352_v31  ;;  %3369 = vmatpush1.bf16.msra.mxu1 %v3368_v13  ;;  %v4922_v31 = vadd.f32 %v4857_v40, %v1867_v53  ;;  %v3226_v29 = vmul.f32 -1.442695, %v2195_v62 }
 0x512   : > { %v3755_v27 = vpop.eup %3754  ;;  %v2310_v25 = vadd.f32 1.0, %v3753_v15  ;;  %3774 = vpow2.f32 %v3223_v26 }
 0x513   : > { %v3757_v19 = vpop.eup %3756  ;;  %v3356_v2 = vpack.c.bf16 %v4909_v42, %v4906_v60  ;;  %v2309_v28 = vadd.f32 1.0, %v3755_v27  ;;  %3776 = vpow2.f32 %v3225_v58  ;;  %v4935_v58 = vadd.f32 %v4871_v32, %v1867_v53 }
 0x514   : > { %v3759_v57 = vpop.eup %3758  ;;  %3778 = vrcp.f32 %v2310_v25  ;;  %v2311_v46 = vadd.f32 1.0, %v3757_v19  ;;  %v2196_v44 = vmul.f32 %v2166_v4, %v4922_v31  ;;  %v3224_v25 = vmul.f32 -1.442695, %v2193_v0 }
 0x515   : > { %v3761_v63 = vpop.eup %3760  ;;  %3780 = vrcp.f32 %v2309_v28  ;;  %v2312_v3 = vadd.f32 1.0, %v3759_v57  ;;  %v2197_v19 = vmul.f32 %v2166_v4, %v4930_v37  ;;  %v2199_v32 = vmul.f32 %v2166_v4, %v4935_v58 }
 0x516   : > { %v3763_v48 = vpop.eup %3762  ;;  %3782 = vrcp.f32 %v2311_v46  ;;  %v2314_v8 = vadd.f32 1.0, %v3761_v63  ;;  %v2402_v57 = vmul.f32 %v4895_v38, %v4803_v18  ;;  %v3227_v46 = vmul.f32 -1.442695, %v2196_v44 }
 0x517   : > { %v3765_v61 = vpop.eup %3764  ;;  %3784 = vrcp.f32 %v2312_v3  ;;  %v2313_v49 = vadd.f32 1.0, %v3763_v48  ;;  %v2401_v3 = vmul.f32 %v4898_v52, %v4806_v9  ;;  %v2403_v48 = vmul.f32 %v4900_v47, %v4809_v51 }
 0x518   : > { %v3767_v12 = vpop.eup %3766  ;;  %3786 = vrcp.f32 %v2314_v8  ;;  %v2315_v55 = vadd.f32 1.0, %v3765_v61  ;;  %v3229_v61 = vmul.f32 -1.442695, %v2198_v6 }
 0x519   : > { %v3769_v24 = vpop.eup %3768  ;;  %3788 = vrcp.f32 %v2313_v49  ;;  %v2316_v26 = vadd.f32 1.0, %v3767_v12 }
 0x51a   : > { %v3771_v13 = vpop.eup %3770  ;;  %3790 = vrcp.f32 %v2315_v55  ;;  %v2318_v40 = vadd.f32 1.0, %v3769_v24  ;;  %v3228_v24 = vmul.f32 -1.442695, %v2197_v19 }
 0x51b   : > { %v3773_v7 = vpop.eup %3772  ;;  %3792 = vrcp.f32 %v2316_v26  ;;  %v2317_v17 = vadd.f32 1.0, %v3771_v13 }
 0x51c   : > { %v3775_v15 = vpop.eup %3774  ;;  %3794 = vrcp.f32 %v2318_v40  ;;  %v2319_v45 = vadd.f32 1.0, %v3773_v7 }
 0x51d   : > { %v3777_v27 = vpop.eup %3776  ;;  %3796 = vrcp.f32 %v2317_v17  ;;  %v2320_v60 = vadd.f32 1.0, %v3775_v15 }
 0x51e   : > { %v3779_v28 = vpop.eup %3778  ;;  %3798 = vrcp.f32 %v2319_v45 }
 0x51f   : > { %v3781_v16 = vpop.eup %3780  ;;  %v2406_v53 = vmul.f32 %v3779_v28, %v4821_v39  ;;  %3800 = vpow2.f32 %v3224_v25  ;;  %v3230_v39 = vmul.f32 -1.442695, %v2199_v32 }
 0x520   : > { %v3783_v63 = vpop.eup %3782  ;;  %v2405_v8 = vmul.f32 %v3781_v16, %v4824_v1  ;;  %3802 = vpow2.f32 %v3226_v29 }
 0x521   : > { %v3785_v49 = vpop.eup %3784  ;;  %v3372_v12 = vpack.c.bf16 %v2406_v53, %v2402_v57  ;;  %v2407_v55 = vmul.f32 %v3783_v63, %v4831_v59  ;;  %3804 = vpow2.f32 %v3227_v46 }
 0x522   : > { %v3787_v18 = vpop.eup %3786  ;;  %v3354_v38 = vpack.c.bf16 %v2405_v8, %v2401_v3  ;;  %3806 = vpow2.f32 %v3229_v61  ;;  %v2408_v59 = vmul.f32 %v3785_v49, %v4835_v20 }
 0x523   : > { %v3789_v26 = vpop.eup %3788  ;;  %v3370_v0 = vpack.c.bf16 %v2407_v55, %v2403_v48  ;;  %3808 = vpow2.f32 %v3228_v24  ;;  %v2410_v13 = vmul.f32 %v3787_v18, %v4837_v30 }
 0x524   : > { %v3791_v9 = vpop.eup %3790  ;;  %3355 = vmatprep.subr.bf16.mxu0 %v3354_v38  ;;  %3810 = vpow2.f32 %v3230_v39  ;;  %v2409_v62 = vmul.f32 %v3789_v26, %v4839_v35 }
 0x525   : > { %v3793_v51 = vpop.eup %3792  ;;  %3371 = vmatprep.subr.bf16.mxu1 %v3370_v0  ;;  %3357 = vmatpush1.bf16.msra.mxu0 %v3356_v2  ;;  %v2411_v42 = vmul.f32 %v3791_v9, %v4841_v43  ;;  %3812 = vrcp.f32 %v2320_v60 }
 0x526   : > { %v3795_v1 = vpop.eup %3794  ;;  %v2412_v52 = vmul.f32 %v3793_v51, %v4848_v33  ;;  %3373 = vmatpush1.bf16.msra.mxu1 %v3372_v12  ;;  %v2322_v33 = vadd.f32 1.0, %v3777_v27 }
 0x527   : > { %v3797_v47 = vpop.eup %3796  ;;  %v2414_v4 = vmul.f32 %v3795_v1, %v4861_v21 }
 0x528   : > { %v3799_v40 = vpop.eup %3798  ;;  %v3360_v7 = vpack.c.bf16 %v2412_v52, %v2408_v59  ;;  %v2413_v17 = vmul.f32 %v3797_v47, %v4869_v50  ;;  %3814 = vrcp.f32 %v2322_v33 }
 0x529   : > { %v3376_v2 = vpack.c.bf16 %v2414_v4, %v2410_v13  ;;  %v2415_v20 = vmul.f32 %v3799_v40, %v4874_v22  ;;  %v3801_v45 = vpop.eup %3800  ;;  %v2442_v13 = vpop.permute.xlu1 %2441 }
 0x52a   : > { %v3358_v44 = vpack.c.bf16 %v2413_v17, %v2409_v62  ;;  %v3803_v25 = vpop.eup %3802  ;;  %v2321_v30 = vadd.f32 1.0, %v3801_v45 }
 0x52b   : > { %v3374_v6 = vpack.c.bf16 %v2415_v20, %v2411_v42  ;;  %v3805_v21 = vpop.eup %3804  ;;  %v2323_v35 = vadd.f32 1.0, %v3803_v25 }
 0x52c   : > { %3359 = vmatprep.subr.bf16.mxu0 %v3358_v44  ;;  %v3807_v50 = vpop.eup %3806  ;;  %3816 = vrcp.f32 %v2321_v30  ;;  %v2324_v15 = vadd.f32 1.0, %v3805_v21 }
 0x52d   : > { %3375 = vmatprep.subr.bf16.mxu1 %v3374_v6  ;;  %3361 = vmatpush1.bf16.msra.mxu0 %v3360_v7  ;;  %v3809_v43 = vpop.eup %3808  ;;  %3818 = vrcp.f32 %v2323_v35  ;;  %v2326_v22 = vadd.f32 1.0, %v3807_v50 }
 0x52e   : > { %3377 = vmatpush1.bf16.msra.mxu1 %v3376_v2  ;;  %v3811_v27 = vpop.eup %3810  ;;  %3820 = vrcp.f32 %v2324_v15  ;;  %v2325_v19 = vadd.f32 1.0, %v3809_v43 }
 0x52f   : > { %3822 = vrcp.f32 %v2326_v22  ;;  %v2327_v28 = vadd.f32 1.0, %v3811_v27  ;;  %v3813_v29 = vpop.eup %3812  ;;  %v5152_v22 = vld [vmem:[#allocation8_spill] sm:$0xff] }
 0x530   : > { %3824 = vrcp.f32 %v2325_v19  ;;  %v2416_v63 = vmul.f32 %v3813_v29, %v4877_v54 }
 0x531   : > { %3826 = vrcp.f32 %v2327_v28 }
 0x532   : > { %v3815_v32 = vpop.eup %3814 }
 0x533   : > { %v2418_v8 = vmul.f32 %v3815_v32, %v4881_v41  ;;  %v3231_v41 = vld [vmem:[%s5117_s5 + $0x20] sm:$0xff] }
 0x536   : > { %v3817_v16 = vpop.eup %3816 }
 0x537   : > { %v3819_v57 = vpop.eup %3818  ;;  %v2417_v12 = vmul.f32 %v3817_v16, %v4915_v11  ;;  %v5149_v11 = vmov 0.0  }
 0x538   : > { %v3821_v53 = vpop.eup %3820  ;;  %v2419_v18 = vmul.f32 %v3819_v57, %v4919_v14  ;;  %v3232_v14 = vld [vmem:[%s5117_s5 + $0x28] sm:$0xff] }
 0x539   : > { %v3823_v46 = vpop.eup %3822  ;;  %v2420_v3 = vmul.f32 %v3821_v53, %v4922_v31  ;;  %v3233_v31 = vld [vmem:[%s5117_s5 + $0x30] sm:$0xff] }
 0x53a   : > { %v3825_v48 = vpop.eup %3824  ;;  %v2422_v61 = vmul.f32 %v3823_v46, %v4925_v36  ;;  %v3234_v36 = vld [vmem:[%s5117_s5 + $0x38] sm:$0xff] }
 0x53b   : > { %v3827_v49 = vpop.eup %3826  ;;  %v3364_v55 = vpack.c.bf16 %v2420_v3, %v2416_v63  ;;  %v2421_v24 = vmul.f32 %v3825_v48, %v4930_v37  ;;  %v2437_v37 = vpop.permute.xlu0 %2436 }
 0x53c   : > { %v3380_v39 = vpack.c.bf16 %v2422_v61, %v2418_v8  ;;  %v2423_v38 = vmul.f32 %v3827_v49, %v4935_v58  ;;  %v2452_v48 = vpop.permute.xlu1 %2451 }
 0x53d   : > { %v3362_v26 = vpack.c.bf16 %v2421_v24, %v2417_v12  ;;  %v5153_v12 = vld [vmem:[#allocation9_spill] sm:$0xff]  ;;  %v5154_v24 = vld [vmem:[#allocation10_spill] sm:$0xff] }
 0x53e   : > { %v3378_v54 = vpack.c.bf16 %v2423_v38, %v2419_v18 }
 0x53f   : > { %3363 = vmatprep.subr.bf16.mxu0 %v3362_v26  ;;  %v2447_v25 = vpop.permute.xlu0 %2446 }
 0x540   : > { %3379 = vmatprep.subr.bf16.mxu1 %v3378_v54  ;;  %3365 = vmatpush1.bf16.msra.mxu0 %v3364_v55 }
 0x541   : > { %3381 = vmatpush1.bf16.msra.mxu1 %v3380_v39 }
 0x543   : > { %3239 = vmatmul.mubr.msk.f32.vlgmr.msra.gmra.mrb[48].mxu0 %vm1217_vm1, %v3231_v41 }
 0x544   : > { %3243 = vmatmul.mubr.msk.f32.vlgmr.msra.gmra.mrb[48].mxu1 %vm1217_vm1, %v3231_v41  ;;  %2536 = vmatprep.mubr.f32.mxu0 %v5149_v11  ;;  %v5155_v41 = vld [vmem:[#allocation11_spill] sm:$0xff] }
 0x545   : > { %2625 = vmatprep.mubr.f32.mxu1 %v5149_v11 }
 0x547   : > { %3240 = vmatmul.mubr.msk.f32.gmra.mrb[50].mxu0 %vm1217_vm1, %v3232_v14 }
 0x548   : > { %3244 = vmatmul.mubr.msk.f32.gmra.mrb[50].mxu1 %vm1217_vm1, %v3232_v14  ;;  %2542 = vmatprep.mubr.f32.mxu0 %v5149_v11 }
 0x549   : > { %2631 = vmatprep.mubr.f32.mxu1 %v5149_v11 }
 0x54b   : > { %3241 = vmatmul.mubr.msk.f32.gmra.mrb[52].mxu0 %vm1217_vm1, %v3233_v31 }
 0x54c   : > { %3245 = vmatmul.mubr.msk.f32.gmra.mrb[52].mxu1 %vm1217_vm1, %v3233_v31  ;;  %2548 = vmatprep.mubr.f32.mxu0 %v5149_v11 }
 0x54d   : > { %2637 = vmatprep.mubr.f32.mxu1 %v5149_v11 }
 0x54f   : > { %3242 = vmatmul.mubr.msk.f32.gmra.mrb[54].mxu0 %vm1217_vm1, %v3234_v36 }
 0x550   : > { %3246 = vmatmul.mubr.msk.f32.gmra.mrb[54].mxu1 %vm1217_vm1, %v3234_v36  ;;  %2782 = vmatprep.mubr.f32.mxu0 %v5149_v11 }
 0x551   : > { %2871 = vmatprep.mubr.f32.mxu1 %v5149_v11 }
 0x616   : > { %v2532_v58 = vpop.f32.mrb[48].mxu0 }
 0x617   : > { %v2533_v0 = vadd.f32 %v2532_v58, %v2437_v37  ;;  %v2621_v9 = vpop.f32.mrb[48].mxu1  ;;  %v2534_v51 = vpop.f32.mrb[49].mxu0  ;;  %v5156_v58 = vld [vmem:[#allocation13_spill] sm:$0xff] }
 0x618   : > { %v2622_v1 = vadd.f32 %v2621_v9, %v2437_v37  ;;  %v2535_v59 = vadd.f32 %v2534_v51, %v2437_v37  ;;  %v2623_v52 = vpop.f32.mrb[49].mxu1  ;;  %v5157_v9 = vld [vmem:[#allocation12_spill] sm:$0xff] }
 0x619   : > { %v2624_v47 = vadd.f32 %v2623_v52, %v2437_v37  ;;  %v2644_v4 = vadd.f32 %v2533_v0, %v4655_v23  ;;  %v5150_v23 = vld [vmem:[#allocation6_spill] sm:$0xff] }
 0x61a   : > { %v2646_v40 = vadd.f32 %v2622_v1, %v4657_v56  ;;  %v2538_v62 = vpop.f32.mrb[50].mxu0  ;;  %v2645_v7 = vadd.f32 %v2535_v59, %v4659_v10  ;;  %v5151_v56 = vld [vmem:[#allocation7_spill] sm:$0xff]  ;;  %v5158_v59 = vld [vmem:[#allocation14_spill] sm:$0xff] }
 0x61b   : > { %v2539_v17 = vadd.f32 %v2538_v62, %v2442_v13  ;;  %v2627_v60 = vpop.f32.mrb[50].mxu1  ;;  %v2540_v42 = vpop.f32.mrb[51].mxu0  ;;  %v2647_v44 = vadd.f32 %v2624_v47, %v4662_v34  ;;  %v2660_v30 = vmul.f32 0.70710677, %v2644_v4  ;;  %v5159_v47 = vld [vmem:[#allocation15_spill] sm:$0xff] }
 0x61c   : > { %v2628_v2 = vadd.f32 %v2627_v60, %v2442_v13  ;;  %v2541_v20 = vadd.f32 %v2540_v42, %v2442_v13  ;;  %v2629_v33 = vpop.f32.mrb[51].mxu1  ;;  %v2662_v21 = vmul.f32 0.70710677, %v2646_v40  ;;  %v2661_v10 = vmul.f32 0.70710677, %v2645_v7  ;;  %v5160_v7 = vld [vmem:[#allocation16_spill] sm:$0xff] }
 0x61d   : > { %v2648_v45 = vadd.f32 %v2539_v17, %v4667_v5  ;;  %v2630_v6 = vadd.f32 %v2629_v33, %v2442_v13  ;;  %v2663_v53 = vmul.f32 0.70710677, %v2647_v44 }
 0x61e   : > { %v2650_v35 = vadd.f32 %v2628_v2, %v5150_v23  ;;  %v2649_v50 = vadd.f32 %v2541_v20, %v5151_v56  ;;  %v2544_v15 = vpop.f32.mrb[52].mxu0  ;;  %v3249_v23 = vld [vmem:[%s5119_s7 + $0x30] sm:$0xff]  ;;  %v2689_v56 = vpop.permute.xlu0 %2688 }
 0x61f   : > { %v2664_v43 = vmul.f32 0.70710677, %v2648_v45  ;;  %v2651_v27 = vadd.f32 %v2630_v6, %v5152_v22  ;;  %v2545_v19 = vadd.f32 %v2544_v15, %v2447_v25  ;;  %v2633_v28 = vpop.f32.mrb[52].mxu1  ;;  %v2546_v29 = vpop.f32.mrb[53].mxu0 }
 0x620   : > { %v2666_v32 = vmul.f32 0.70710677, %v2650_v35  ;;  %v2665_v34 = vmul.f32 0.70710677, %v2649_v50  ;;  %v2634_v16 = vadd.f32 %v2633_v28, %v2447_v25  ;;  %v2547_v5 = vadd.f32 %v2546_v29, %v2447_v25  ;;  %v2635_v57 = vpop.f32.mrb[53].mxu1  ;;  %v3250_v35 = vld [vmem:[%s5119_s7 + $0x38] sm:$0xff]  ;;  %v2694_v50 = vpop.permute.xlu1 %2693 }
 0x621   : > { %v3384_v46 = vpack.c.bf16 %v2664_v43, %v2660_v30  ;;  %v2667_v63 = vmul.f32 0.70710677, %v2651_v27  ;;  %v2636_v3 = vadd.f32 %v2635_v57, %v2447_v25  ;;  %v2652_v55 = vadd.f32 %v2545_v19, %v5153_v12  ;;  %v3247_v30 = vld [vmem:[%s5119_s7 + $0x20] sm:$0xff] }
 0x622   : > { %v3392_v8 = vpack.c.bf16 %v2666_v32, %v2662_v21  ;;  %v2550_v61 = vpop.f32.mrb[54].mxu0  ;;  %v3382_v49 = vpack.c.bf16 %v2665_v34, %v2661_v10  ;;  %v2654_v18 = vadd.f32 %v2634_v16, %v5154_v24  ;;  %v2653_v14 = vadd.f32 %v2547_v5, %v5155_v41  ;;  %v3248_v21 = vld [vmem:[%s5119_s7 + $0x28] sm:$0xff]  ;;  %v2699_v15 = vpop.permute.xlu0 %2698 }
 0x623   : > { %v2551_v39 = vadd.f32 %v2550_v61, %v2452_v48  ;;  %v2639_v38 = vpop.f32.mrb[54].mxu1  ;;  %v2552_v26 = vpop.f32.mrb[55].mxu0  ;;  %v3390_v54 = vpack.c.bf16 %v2667_v63, %v2663_v53  ;;  %v2655_v0 = vadd.f32 %v2636_v3, %v5156_v58  ;;  %v2668_v4 = vmul.f32 0.70710677, %v2652_v55 }
 0x624   : > { %v2640_v31 = vadd.f32 %v2639_v38, %v2452_v48  ;;  %v2553_v36 = vadd.f32 %v2552_v26, %v2452_v48  ;;  %v2641_v37 = vpop.f32.mrb[55].mxu1  ;;  %3383 = vmatprep.subr.bf16.mxu0 %v3382_v49  ;;  %v2670_v40 = vmul.f32 0.70710677, %v2654_v18  ;;  %v2669_v60 = vmul.f32 0.70710677, %v2653_v14  ;;  %v2704_v10 = vpop.permute.xlu1 %2703 }
 0x625   : > { %v2656_v51 = vadd.f32 %v2551_v39, %v5157_v9  ;;  %v2642_v1 = vadd.f32 %v2641_v37, %v2452_v48  ;;  %3391 = vmatprep.subr.bf16.mxu1 %v3390_v54  ;;  %3385 = vmatpush1.bf16.msra.mxu0 %v3384_v46  ;;  %v2671_v20 = vmul.f32 0.70710677, %v2655_v0 }
 0x626   : > { %v2658_v52 = vadd.f32 %v2640_v31, %v5158_v59  ;;  %v2657_v13 = vadd.f32 %v2553_v36, %v5159_v47  ;;  %3393 = vmatpush1.bf16.msra.mxu1 %v3392_v8  ;;  %v2903_v28 = vpop.permute.xlu0 %2902 }
 0x627   : > { %v2672_v62 = vmul.f32 0.70710677, %v2656_v51  ;;  %v2659_v17 = vadd.f32 %v2642_v1, %v5160_v7 }
 0x628   : > { %v2674_v42 = vmul.f32 0.70710677, %v2658_v52  ;;  %v2673_v2 = vmul.f32 0.70710677, %v2657_v13  ;;  %v2908_v8 = vpop.permute.xlu1 %2907 }
 0x629   : > { %v3388_v33 = vpack.c.bf16 %v2672_v62, %v2668_v4  ;;  %v2675_v44 = vmul.f32 0.70710677, %v2659_v17 }
 0x62a   : > { %v3396_v45 = vpack.c.bf16 %v2674_v42, %v2670_v40  ;;  %v3386_v6 = vpack.c.bf16 %v2673_v2, %v2669_v60  ;;  %v2913_v31 = vpop.permute.xlu0 %2912 }
 0x62b   : > { %v3394_v25 = vpack.c.bf16 %v2675_v44, %v2671_v20 }
 0x62c   : > { %3387 = vmatprep.subr.bf16.mxu0 %v3386_v6  ;;  %v2918_v40 = vpop.permute.xlu1 %2917 }
 0x62d   : > { %3395 = vmatprep.subr.bf16.mxu1 %v3394_v25  ;;  %3389 = vmatpush1.bf16.msra.mxu0 %v3388_v33 }
 0x62e   : > { %3397 = vmatpush1.bf16.msra.mxu1 %v3396_v45 }
 0x630   : > { %3255 = vmatmul.mubr.msk.f32.vlgmr.msra.gmra.mrb[56].mxu0 %vm634_vm0, %v3247_v30 }
 0x631   : > { %3259 = vmatmul.mubr.msk.f32.vlgmr.msra.gmra.mrb[56].mxu1 %vm634_vm0, %v3247_v30  ;;  %2788 = vmatprep.mubr.f32.mxu0 %v5149_v11 }
 0x632   : > { %2877 = vmatprep.mubr.f32.mxu1 %v5149_v11 }
 0x634   : > { %3256 = vmatmul.mubr.msk.f32.gmra.mrb[58].mxu0 %vm634_vm0, %v3248_v21 }
 0x635   : > { %3260 = vmatmul.mubr.msk.f32.gmra.mrb[58].mxu1 %vm634_vm0, %v3248_v21  ;;  %2794 = vmatprep.mubr.f32.mxu0 %v5149_v11 }
 0x636   : > { %2883 = vmatprep.mubr.f32.mxu1 %v5149_v11 }
 0x638   : > { %3257 = vmatmul.mubr.msk.f32.gmra.mrb[60].mxu0 %vm634_vm0, %v3249_v23 }
 0x639   : > { %3261 = vmatmul.mubr.msk.f32.gmra.mrb[60].mxu1 %vm634_vm0, %v3249_v23  ;;  %2800 = vmatprep.mubr.f32.mxu0 %v5149_v11 }
 0x63a   : > { %2889 = vmatprep.mubr.f32.mxu1 %v5149_v11 }
 0x63c   : > { %3258 = vmatmul.mubr.msk.f32.gmra.mrb[62].mxu0 %vm634_vm0, %v3250_v35 }
 0x63d   : > { %3262 = vmatmul.mubr.msk.f32.gmra.mrb[62].mxu1 %vm634_vm0, %v3250_v35 }
 0x703   : > { %v2784_v43 = vpop.f32.mrb[56].mxu0 }
 0x704   : > { %v2785_v22 = vadd.f32 %v2784_v43, %v2689_v56  ;;  %v2873_v27 = vpop.f32.mrb[56].mxu1  ;;  %v2786_v19 = vpop.f32.mrb[57].mxu0 }
 0x705   : > { %v2874_v29 = vadd.f32 %v2873_v27, %v2689_v56  ;;  %v2787_v32 = vadd.f32 %v2786_v19, %v2689_v56  ;;  %v2875_v34 = vpop.f32.mrb[57].mxu1 }
 0x706   : > { %v2920_v16 = vmul.f32 %v2903_v28, %v2785_v22  ;;  %v2876_v5 = vadd.f32 %v2875_v34, %v2689_v56 }
 0x707   : > { %v2922_v57 = vmul.f32 %v2903_v28, %v2874_v29  ;;  %v2921_v11 = vmul.f32 %v2903_v28, %v2787_v32  ;;  %v2790_v53 = vpop.f32.mrb[58].mxu0 }
 0x708   : > { %3828 = vtanh.f32 %v2920_v16  ;;  %v2923_v46 = vmul.f32 %v2903_v28, %v2876_v5  ;;  %v2791_v63 = vadd.f32 %v2790_v53, %v2694_v50  ;;  %v2879_v3 = vpop.f32.mrb[58].mxu1  ;;  %v2792_v48 = vpop.f32.mrb[59].mxu0 }
 0x709   : > { %3830 = vtanh.f32 %v2922_v57  ;;  %v2880_v61 = vadd.f32 %v2879_v3, %v2694_v50  ;;  %v2793_v49 = vadd.f32 %v2792_v48, %v2694_v50  ;;  %v2881_v12 = vpop.f32.mrb[59].mxu1 }
 0x70a   : > { %3832 = vtanh.f32 %v2921_v11  ;;  %v2924_v55 = vmul.f32 %v2908_v8, %v2791_v63  ;;  %v2882_v24 = vadd.f32 %v2881_v12, %v2694_v50 }
 0x70b   : > { %3834 = vtanh.f32 %v2923_v46  ;;  %v2926_v18 = vmul.f32 %v2908_v8, %v2880_v61  ;;  %v2925_v39 = vmul.f32 %v2908_v8, %v2793_v49  ;;  %v2796_v38 = vpop.f32.mrb[60].mxu0 }
 0x70c   : > { %3836 = vtanh.f32 %v2924_v55  ;;  %v2927_v26 = vmul.f32 %v2908_v8, %v2882_v24  ;;  %v2797_v54 = vadd.f32 %v2796_v38, %v2699_v15  ;;  %v2885_v41 = vpop.f32.mrb[60].mxu1  ;;  %v2798_v14 = vpop.f32.mrb[61].mxu0 }
 0x70d   : > { %3838 = vtanh.f32 %v2926_v18  ;;  %v2886_v36 = vadd.f32 %v2885_v41, %v2699_v15  ;;  %v2799_v37 = vadd.f32 %v2798_v14, %v2699_v15  ;;  %v2887_v58 = vpop.f32.mrb[61].mxu1 }
 0x70e   : > { %3840 = vtanh.f32 %v2925_v39  ;;  %v2928_v0 = vmul.f32 %v2913_v31, %v2797_v54  ;;  %v2888_v9 = vadd.f32 %v2887_v58, %v2699_v15 }
 0x70f   : > { %3842 = vtanh.f32 %v2927_v26  ;;  %v2930_v51 = vmul.f32 %v2913_v31, %v2886_v36  ;;  %v2929_v1 = vmul.f32 %v2913_v31, %v2799_v37  ;;  %v2802_v59 = vpop.f32.mrb[62].mxu0 }
 0x710   : > { %3844 = vtanh.f32 %v2928_v0  ;;  %v2931_v52 = vmul.f32 %v2913_v31, %v2888_v9  ;;  %v2803_v47 = vadd.f32 %v2802_v59, %v2704_v10  ;;  %v2891_v13 = vpop.f32.mrb[62].mxu1  ;;  %v2804_v4 = vpop.f32.mrb[63].mxu0 }
 0x711   : > { %3846 = vtanh.f32 %v2930_v51  ;;  %v2892_v62 = vadd.f32 %v2891_v13, %v2704_v10  ;;  %v2805_v7 = vadd.f32 %v2804_v4, %v2704_v10  ;;  %v2893_v17 = vpop.f32.mrb[63].mxu1 }
 0x712   : > { %v3829_v60 = vpop.eup %3828  ;;  %3848 = vtanh.f32 %v2929_v1  ;;  %v2932_v42 = vmul.f32 %v2918_v40, %v2803_v47  ;;  %v2894_v2 = vadd.f32 %v2893_v17, %v2704_v10 }
 0x713   : > { %v3831_v20 = vpop.eup %3830  ;;  %2952 = vst [vmem:[%s5040_s26] sm:$0xff] %v3829_v60  ;;  %3850 = vtanh.f32 %v2931_v52  ;;  %v2934_v33 = vmul.f32 %v2918_v40, %v2892_v62  ;;  %v2933_v44 = vmul.f32 %v2918_v40, %v2805_v7 }
 0x714   : > { %v3833_v45 = vpop.eup %3832  ;;  %2954 = vst [vmem:[%s5040_s26 + $0x10] sm:$0xff] %v3831_v20  ;;  %3852 = vtanh.f32 %v2932_v42  ;;  %v2935_v6 = vmul.f32 %v2918_v40, %v2894_v2 }
 0x715   : > { %v3835_v25 = vpop.eup %3834  ;;  %2953 = vst [vmem:[%s5040_s26 + $0x8] sm:$0xff] %v3833_v45  ;;  %3854 = vtanh.f32 %v2934_v33 }
 0x716   : > { %v3837_v30 = vpop.eup %3836  ;;  %2955 = vst [vmem:[%s5040_s26 + $0x18] sm:$0xff] %v3835_v25  ;;  %3856 = vtanh.f32 %v2933_v44 }
 0x717   : > { %v3839_v21 = vpop.eup %3838  ;;  %2956 = vst [vmem:[%s5040_s26 + $0x20] sm:$0xff] %v3837_v30  ;;  %3858 = vtanh.f32 %v2935_v6 }
 0x718   : > { %v3841_v23 = vpop.eup %3840  ;;  %2958 = vst [vmem:[%s5040_s26 + $0x30] sm:$0xff] %v3839_v21 }
 0x719   : > { %v3843_v35 = vpop.eup %3842  ;;  %2957 = vst [vmem:[%s5040_s26 + $0x28] sm:$0xff] %v3841_v23 }
 0x71a   : > { %v3845_v56 = vpop.eup %3844  ;;  %2959 = vst [vmem:[%s5040_s26 + $0x38] sm:$0xff] %v3843_v35 }
 0x71b   : > { %v3847_v50 = vpop.eup %3846  ;;  %2960 = vst [vmem:[%s5040_s26 + $0x40] sm:$0xff] %v3845_v56 }
 0x71c   : > { %v3849_v15 = vpop.eup %3848  ;;  %2962 = vst [vmem:[%s5040_s26 + $0x50] sm:$0xff] %v3847_v50 }
 0x71d   : > { %v3851_v10 = vpop.eup %3850  ;;  %2961 = vst [vmem:[%s5040_s26 + $0x48] sm:$0xff] %v3849_v15 }
 0x71e   : > { %v3853_v43 = vpop.eup %3852  ;;  %2963 = vst [vmem:[%s5040_s26 + $0x58] sm:$0xff] %v3851_v10 }
 0x71f   : > { %v3855_v22 = vpop.eup %3854  ;;  %2964 = vst [vmem:[%s5040_s26 + $0x60] sm:$0xff] %v3853_v43 }
 0x720   : > { %v3857_v27 = vpop.eup %3856  ;;  %2966 = vst [vmem:[%s5040_s26 + $0x70] sm:$0xff] %v3855_v22 }
 0x721   : > { %v3859_v19 = vpop.eup %3858  ;;  %2965 = vst [vmem:[%s5040_s26 + $0x68] sm:$0xff] %v3857_v27 }
 0x722   : > { %2967 = vst [vmem:[%s5040_s26 + $0x78] sm:$0xff] %v3859_v19 }
 0x723   : > { %3889 = shalt.err (!%p3886_p5)
}
 0x724   : > { %s3890_s11 = scalar_lea.hbm %s5060_s30, 2048  ;;  %s3894_s28 = scalar_lea.hbm %s5122_s10, 4096 }
 0x725   : > { %p3891_p7 = scmp.ne.s32.totalorder %s5060_s30, %s3890_s11  ;;  %p3895_p12 = scmp.lt.u32.totalorder %s5060_s30, %s5122_s10 }
 0x726   : > { %p3896_p13 = scmp.lt.u32.totalorder %s3894_s28, %s3890_s11  ;;  %p3898_p1 = scmp.lt.u32.totalorder %s3890_s11, %s5060_s30 }
 0x727   : > { %p3892_p10 = pnand %p3891_p7, %p4039_p6 }
 0x728   : > { %p3897_p0 = por %p3896_p13, %p3895_p12 }
 0x729   : > { %p3893_p11 = pneg %p3892_p10 }
 0x72a   : > { %p3899_p2 = por %p3898_p1, %p3897_p0 }
 0x72c   : > { %p3900_p3 = pnand %p3899_p2, %p3893_p11 }
 0x72e   : > { %3903 = shalt.err (!%p3900_p3)
}
 0x72f   : > { %s3943_s20 = smov 512   ;;  %s3944_s18 = smov 1024  }
 0x730   : > { %s3945_s25 = smov 32  }
 0x731   : > { %3398 = dma.vmem_to_hbm [thread:$0]  (%p4039_p6), %s5063_s27, 2048, %s5060_s30, %s5070_s17, %s3943_s20, %s3944_s18, %s3945_s25  }
 0x732 PF: > { %s2997_s26 = sand.u32 1, %s3926_s13   ;;  %p3401_p4 = pnand %p3052_p9, %p4043_p8 }
 0x733   : > { %s2998_s11 = scalar_lea.sflag [#allocation4], %s2997_s26 }
 0x734   : > { %3921 = dma.done.wait (!%p3401_p4), %s2998_s11, 2048  }
 0x735   : > { %3923 = vsyncadd (!%p3401_p4), %s2998_s11, 4294965248  ;;  %p20_p5 = scmp.ge.s32.totalorder %s4024_s19, 4   ;;  %s5161_s13 = smov %s3930_s14 }
 0x736   : > { %s5162_s14 = smov %s3934_s15  ;;  %s5163_s15 = smov %s4037_s22 }
 0x737   : > { %s5164_s16 = smov %s4024_s19  ;;  %22 = sbr.rel (!%p20_p5) target bundleno = 3 (0x3), region = 131 }
 0x73e   :  { %3003 = vsyncpa [#allocation4], 1 }
 0x73f   :  { %3005 = vsyncpa [#allocation4 + $0x1], 1 }

</bundles_post_ra>
